<compile_context>
chip_gen: v7x
topology: tpu7x:2x2x1
jax: 0.10.0
libtpu: 0.0.40
codegen_flags: <defaults>
</compile_context>

<pallas_src>
import jax
import jax.numpy as jnp
import numpy as np
from jax import lax
from jax.experimental import pallas as pl
from jax.experimental.pallas import tpu as pltpu

LANE = 128      # TPU lane width  (last dim)
SUBLANE = 8     # TPU sublane width (second-to-last dim)


def _round_up(x, m):
    return (x + m - 1) // m * m


def _sepconv_kernel(xpad_hbm, wdw_ref, bias_ref, wpw_ref, out_ref, xbuf, sem):
    # xpad_hbm : (N, Hp, Wp, Cin_p)            padded bf16 input, left in HBM (pl.ANY)
    # wdw_ref  : (KH, KW, Cin_p)               depthwise weights, f32 (BN scale folded)
    # bias_ref : (1, Cout_p)                   BN shift folded through pointwise weights
    # wpw_ref  : (Cin_p, Cout_p)               pointwise weights (bf16)
    # out_ref  : (1, TILE_H, Wt, Cout_p)       output tile
    # xbuf     : (2, TILE_H+KH-1, Wp, Cin_p)   double-buffered bf16 halo slab (VMEM)
    # sem      : (2,)                          DMA semaphores
    KH, KW, cin_p = wdw_ref.shape
    _, tile_h, wt, cout_p = out_ref.shape
    rows = tile_h + KH - 1

    n = pl.program_id(0)
    i = pl.program_id(1)
    n_h = pl.num_programs(1)
    slot = i % 2

    def start_fetch(row_tile, dst_slot):
        start = pl.multiple_of(row_tile * tile_h, tile_h)
        pltpu.make_async_copy(
            xpad_hbm.at[n, pl.ds(start, rows)],
            xbuf.at[dst_slot],
            sem.at[dst_slot],
        ).start()

    # Prime the double buffer at the start of every row sweep (i == 0).
    # TODO(synk): hide this per-image first-slab DMA by prefetching across the
    # batch axis; that needs the batch axis to run sequentially on one core,
    # which conflicts with "parallel" megacore sharding, so it stays exposed.
    @pl.when(i == 0)
    def _():
        start_fetch(0, 0)

    # Prefetch the next halo slab while computing on the current one.
    @pl.when(i + 1 < n_h)
    def _():
        start_fetch(i + 1, 1 - slot)

    # Wait for the current slab's DMA.
    pltpu.make_async_copy(
        xpad_hbm.at[n, pl.ds(pl.multiple_of(i * tile_h, tile_h), rows)],
        xbuf.at[slot],
        sem.at[slot],
    ).wait()

    # Depthwise KHxKW conv: all KH*KW shifted tap products summed in one fused
    # expression (single accumulator pass), f32 accumulate on the VPU.  BN
    # scale is already folded into wdw, so no per-pixel scale multiply here.
    w = wdw_ref[...]
    taps = []
    for kh in range(KH):
        # One wp-wide bf16 row slab per kh, upcast once, shifted in-register.
        xrow = xbuf[slot, kh:kh + tile_h, :, :].astype(jnp.float32)
        for kw in range(KW):
            taps.append(xrow[:, kw:kw + wt, :] * w[kh, kw, :])
    acc = taps[0]
    for t in taps[1:]:
        acc = acc + t

    # Pointwise 1x1 conv == matmul over channels on the MXU (bf16 in, f32 acc),
    # plus the BN-shift contribution as a per-Cout bias.
    y = jnp.dot(acc.reshape(tile_h * wt, cin_p).astype(jnp.bfloat16),
                wpw_ref[...],
                preferred_element_type=jnp.float32)
    y = y + bias_ref[...]
    out_ref[...] = y.reshape(1, tile_h, wt, cout_p).astype(out_ref.dtype)


def separable_conv2d(x_nchw, w_dw, w_pw, gamma, beta, running_mean, running_var,
                     *, kernel_size=3, stride=1, dilation=1, eps=1e-5,
                     tile_h=32, vmem_budget_bytes=20 * 1024 * 1024):
    """Forward pass matching SeparableConv2d(inplanes, planes, 3, 1, 1), eval mode."""
    # TODO(synk): the Xception stride=2 / dilation>1 variants are not covered here.
    assert stride == 1 and dilation == 1, "kernel covers the stride=1/dilation=1 path"
    N, Cin, H, W = x_nchw.shape
    Cout = w_pw.shape[0]
    KH = KW = kernel_size

    k_eff = kernel_size + (kernel_size - 1) * (dilation - 1)
    pad_total = k_eff - 1
    pad_beg = pad_total // 2

    Hout, Wout = H, W                       # stride-1 "fixed_padding" keeps H, W

    # Lane/sublane/tile-friendly padded sizes.
    cin_p = _round_up(Cin, LANE)
    cout_p = _round_up(Cout, LANE)
    wout_p = _round_up(Wout, SUBLANE)
    wp = _round_up(wout_p + pad_total, SUBLANE)

    in_dtype = jnp.bfloat16                 # halved HBM input stream / VMEM slab
    out_dtype = x_nchw.dtype
    out_isize = np.dtype(out_dtype).itemsize

    # Pick the largest sublane-multiple tile_h that fits the image and a
    # conservative VMEM budget (headroom for v7x's 64 MiB / ~32 MiB scoped).
    def vmem_estimate(th):
        rows_ = th + KH - 1
        xbuf_b = 2 * rows_ * wp * cin_p * 2                       # bf16 halo slab x2
        out_b = 2 * th * wout_p * cout_p * out_isize              # pipelined out block
        w_b = 2 * (KH * KW * cin_p * 4 + cin_p * cout_p * 2 + cout_p * 4)
        return xbuf_b + out_b + w_b

    tile_h = max(SUBLANE, _round_up(min(tile_h, _round_up(Hout, SUBLANE)), SUBLANE))
    while tile_h > SUBLANE and vmem_estimate(tile_h) > vmem_budget_bytes:
        tile_h -= SUBLANE

    hout_p = _round_up(Hout, tile_h)
    n_h = hout_p // tile_h
    hp = hout_p + pad_total
    rows = tile_h + KH - 1

    # NCHW -> NHWC, single fused pad (halo + alignment + channel pad), bf16 cast.
    # TODO(synk): keeping NHWC (and the padding) resident across layers would
    # remove these whole-tensor XLA pre/post passes for memory-bound deployment.
    x = jnp.transpose(x_nchw, (0, 2, 3, 1))
    xpad = jnp.pad(x, ((0, 0),
                       (pad_beg, hp - H - pad_beg),
                       (pad_beg, wp - W - pad_beg),
                       (0, cin_p - Cin))).astype(in_dtype)

    # Fold BatchNorm (eval) into the depthwise weights (scale) and a per-Cout
    # bias routed through the pointwise weights (shift).  Folded depthwise
    # weights stay in f32 (bf16 could lose precision for extreme gamma/var).
    inv_std = 1.0 / jnp.sqrt(running_var + eps)
    scale = gamma * inv_std                                    # (Cin,)
    shift = beta - running_mean * scale                        # (Cin,)

    wdw = jnp.transpose(w_dw[:, 0, :, :], (1, 2, 0)) * scale   # (KH, KW, Cin)
    wdw = jnp.pad(wdw, ((0, 0), (0, 0), (0, cin_p - Cin))).astype(jnp.float32)

    wpw = jnp.transpose(w_pw[:, :, 0, 0], (1, 0))              # (Cin, Cout)
    bias = shift @ wpw                                         # (Cout,)
    wpw_p = jnp.pad(wpw, ((0, cin_p - Cin), (0, cout_p - Cout))).astype(jnp.bfloat16)
    bias_p = jnp.pad(bias, (0, cout_p - Cout)).astype(jnp.float32).reshape(1, cout_p)

    flops = 2 * N * hout_p * wout_p * (KH * KW * cin_p + cin_p * cout_p)
    bytes_accessed = (xpad.size * 2
                      + N * hout_p * wout_p * cout_p * out_isize
                      + wdw.size * 4 + wpw_p.size * 2 + bias_p.size * 4)

    out_nhwc = pl.pallas_call(
        _sepconv_kernel,
        out_shape=jax.ShapeDtypeStruct((N, hout_p, wout_p, cout_p), out_dtype),
        grid=(N, n_h),
        in_specs=[
            pl.BlockSpec(memory_space=pl.ANY),                       # padded input (HBM)
            pl.BlockSpec((KH, KW, cin_p), lambda n, i: (0, 0, 0)),   # depthwise weights
            pl.BlockSpec((1, cout_p), lambda n, i: (0, 0)),          # folded bias
            pl.BlockSpec((cin_p, cout_p), lambda n, i: (0, 0)),      # pointwise weights
        ],
        out_specs=pl.BlockSpec((1, tile_h, wout_p, cout_p),
                               lambda n, i: (n, i, 0, 0)),
        scratch_shapes=[
            pltpu.VMEM((2, rows, wp, cin_p), in_dtype),              # halo slab x2 slots
            pltpu.SemaphoreType.DMA((2,)),
        ],
        compiler_params=pltpu.CompilerParams(
            # Batch axis may be split across TensorCores (v7x megacore).  The H
            # axis stays "arbitrary": the manual double-buffer primes at i == 0
            # and relies on in-order execution along that axis.
            # TODO(synk): for N==1 on v7x, split the H range into a size-2
            # "parallel" axis (with per-half priming) so both TensorCores work.
            dimension_semantics=("parallel", "arbitrary"),
            vmem_limit_bytes=32 * 1024 * 1024,
        ),
        cost_estimate=pl.CostEstimate(
            flops=int(flops), transcendentals=0,
            bytes_accessed=int(bytes_accessed)),
    )(xpad, wdw, bias_p, wpw_p)

    # Strip alignment padding, NHWC -> NCHW.
    out = out_nhwc[:, :Hout, :Wout, :Cout]
    return jnp.transpose(out, (0, 3, 1, 2))


def _reference(x_nchw, w_dw, w_pw, gamma, beta, running_mean, running_var, eps=1e-5):
    """Pure-JAX reference (lax convs) of the same forward pass, NCHW."""
    Cin = x_nchw.shape[1]
    xpad = jnp.pad(x_nchw, ((0, 0), (0, 0), (1, 1), (1, 1)))
    dw = lax.conv_general_dilated(
        xpad, w_dw, window_strides=(1, 1), padding="VALID",
        dimension_numbers=("NCHW", "OIHW", "NCHW"), feature_group_count=Cin)
    bn = (dw - running_mean[None, :, None, None]) / jnp.sqrt(
        running_var[None, :, None, None] + eps)
    bn = bn * gamma[None, :, None, None] + beta[None, :, None, None]
    pw = lax.conv_general_dilated(
        bn, w_pw, window_strides=(1, 1), padding="VALID",
        dimension_numbers=("NCHW", "OIHW", "NCHW"))
    return pw


def _make_inputs(key, N, Cin, Cout, H, W, ksize=3):
    kx, kdw, kpw, kg, kb, km, kv = jax.random.split(key, 7)
    x = jax.random.normal(kx, (N, Cin, H, W), dtype=jnp.float32)
    # Conv2d(inplanes, inplanes, 3, groups=inplanes, bias=False) weight: [Cin, 1, 3, 3]
    w_dw = 0.1 * jax.random.normal(kdw, (Cin, 1, ksize, ksize), dtype=jnp.float32)
    # Conv2d(inplanes, planes, 1, bias=False) weight: [Cout, Cin, 1, 1]
    w_pw = 0.1 * jax.random.normal(kpw, (Cout, Cin, 1, 1), dtype=jnp.float32)
    # BatchNorm2d(inplanes) params / running stats (eval mode)
    gamma = 1.0 + 0.1 * jax.random.normal(kg, (Cin,), dtype=jnp.float32)
    beta = 0.1 * jax.random.normal(kb, (Cin,), dtype=jnp.float32)
    running_mean = 0.1 * jax.random.normal(km, (Cin,), dtype=jnp.float32)
    running_var = 1.0 + 0.1 * jax.random.uniform(kv, (Cin,), dtype=jnp.float32)
    return x, w_dw, w_pw, gamma, beta, running_mean, running_var


if __name__ == "__main__":
    key = jax.random.PRNGKey(0)
    k_small, k_large = jax.random.split(key)

    # bf16 input stream + bf16 MXU operands (f32 accumulate) -> relaxed
    # tolerance vs the f32 reference.
    RTOL, ATOL = 5e-2, 2e-2

    # Module-scale small case; tile_h=8 forces multiple H tiles so the
    # double-buffered halo pipeline is exercised even at 16x16.
    args = _make_inputs(k_small, N=2, Cin=4, Cout=8, H=16, W=16)
    out = jax.block_until_ready(separable_conv2d(*args, tile_h=8))
    ref = _reference(*args)
    np.testing.assert_allclose(np.asarray(out), np.asarray(ref), rtol=RTOL, atol=ATOL)

    # Larger case: multi-lane-tile channels and multiple H tiles at the
    # default (large) tile_h.
    args = _make_inputs(k_large, N=1, Cin=256, Cout=256, H=64, W=64)
    out = jax.block_until_ready(separable_conv2d(*args))
    ref = _reference(*args)
    np.testing.assert_allclose(np.asarray(out), np.asarray(ref), rtol=RTOL, atol=ATOL)

    print("KERNEL_OK")
</pallas_src>

<mosaic_0001>
module attributes {stable_mosaic.version = 11 : i64} {
  func.func @_sepconv_kernel(%arg0: i32, %arg1: i32, %arg2: memref<2x18x24x128xbf16, #tpu.memory_space<any>>, %arg3: memref<3x3x128xf32, #tpu.memory_space<vmem>>, %arg4: memref<1x128xf32, #tpu.memory_space<vmem>>, %arg5: memref<128x128xbf16, #tpu.memory_space<vmem>>, %arg6: memref<1x8x16x128xf32, #tpu.memory_space<vmem>>, %arg7: memref<2x10x24x128xbf16, #tpu.memory_space<vmem>>, %arg8: memref<2x!tpu.dma_semaphore, #tpu.memory_space<semaphore_mem>>) attributes {dimension_semantics = [#tpu.dimension_semantics<parallel>, #tpu.dimension_semantics<arbitrary>], iteration_bounds = array<i64: 2, 2>, scalar_prefetch = 0 : i64, scratch_operands = 2 : i64, tpu.core_type = #tpu.core_type<tc>, window_params = [{}, {pipeline_mode = #tpu.pipeline_mode<synchronous>, transform_indices = @transform_1, window_bounds = array<i64: 3, 3, 128>}, {pipeline_mode = #tpu.pipeline_mode<synchronous>, transform_indices = @transform_2, window_bounds = array<i64: 1, 128>}, {pipeline_mode = #tpu.pipeline_mode<synchronous>, transform_indices = @transform_3, window_bounds = array<i64: 128, 128>}, {transform_indices = @transform_4, window_bounds = array<i64: 1, 8, 16, 128>}]} {
    %c2_i32 = arith.constant 2 : i32
    %c0_i32 = arith.constant 0 : i32
    %0 = arith.cmpi eq, %c2_i32, %c0_i32 : i32
    %c1_i32 = arith.constant 1 : i32
    %1 = arith.select %0, %c1_i32, %c2_i32 : i32
    %2 = arith.remsi %arg1, %1 : i32
    %c0_i32_0 = arith.constant 0 : i32
    %3 = arith.cmpi ne, %2, %c0_i32_0 : i32
    %c0_i32_1 = arith.constant 0 : i32
    %4 = arith.cmpi slt, %2, %c0_i32_1 : i32
    %c0_i32_2 = arith.constant 0 : i32
    %5 = arith.cmpi slt, %1, %c0_i32_2 : i32
    %6 = arith.xori %4, %5 : i1
    %7 = arith.andi %6, %3 : i1
    %8 = arith.addi %2, %1 : i32
    %9 = arith.select %7, %8, %2 : i32
    %c0_i32_3 = arith.constant 0 : i32
    %10 = arith.cmpi eq, %arg1, %c0_i32_3 : i32
    %11 = arith.extui %10 : i1 to i32
    %c0_i32_4 = arith.constant 0 : i32
    %12 = arith.cmpi ne, %11, %c0_i32_4 : i32
    scf.if %12 {
      %c0_i32_30 = arith.constant 0 : i32
      %109 = tpu.assume_multiple %c0_i32_30, 8 : i32
      %c0_i32_31 = arith.constant 0 : i32
      %c0_i32_32 = arith.constant 0 : i32
      %c0_i32_33 = arith.constant 0 : i32
      %c0_i32_34 = arith.constant 0 : i32
      %110 = tpu.memref_slice %arg2[%arg0, %109, %c0_i32_33, %c0_i32_34] : memref<2x18x24x128xbf16, #tpu.memory_space<any>> -> memref<1x10x24x128xbf16, #tpu.memory_space<any>>
      %111 = tpu.memref_squeeze %110 : memref<1x10x24x128xbf16, #tpu.memory_space<any>> -> memref<10x24x128xbf16, #tpu.memory_space<any>>
      %c0_i32_35 = arith.constant 0 : i32
      %c0_i32_36 = arith.constant 0 : i32
      %c0_i32_37 = arith.constant 0 : i32
      %112 = tpu.memref_slice %arg7[%c0_i32_31, %c0_i32_35, %c0_i32_36, %c0_i32_37] : memref<2x10x24x128xbf16, #tpu.memory_space<vmem>> -> memref<1x10x24x128xbf16, #tpu.memory_space<vmem>>
      %113 = tpu.memref_squeeze %112 : memref<1x10x24x128xbf16, #tpu.memory_space<vmem>> -> memref<10x24x128xbf16, #tpu.memory_space<vmem>>
      %114 = tpu.memref_slice %arg8[%c0_i32_32] : memref<2x!tpu.dma_semaphore, #tpu.memory_space<semaphore_mem>> -> memref<1x!tpu.dma_semaphore, #tpu.memory_space<semaphore_mem>>
      %115 = tpu.memref_squeeze %114 : memref<1x!tpu.dma_semaphore, #tpu.memory_space<semaphore_mem>> -> memref<!tpu.dma_semaphore, #tpu.memory_space<semaphore_mem>>
      tpu.enqueue_dma source(%111 : memref<10x24x128xbf16, #tpu.memory_space<any>>) target(%113 : memref<10x24x128xbf16, #tpu.memory_space<vmem>>) target_semaphore(%115 : memref<!tpu.dma_semaphore, #tpu.memory_space<semaphore_mem>>)
    } else {
    }
    %c1_i32_5 = arith.constant 1 : i32
    %13 = arith.addi %arg1, %c1_i32_5 : i32
    %c2_i32_6 = arith.constant 2 : i32
    %14 = arith.cmpi slt, %13, %c2_i32_6 : i32
    %15 = arith.extui %14 : i1 to i32
    %c0_i32_7 = arith.constant 0 : i32
    %16 = arith.cmpi ne, %15, %c0_i32_7 : i32
    scf.if %16 {
      %c1_i32_30 = arith.constant 1 : i32
      %109 = arith.addi %arg1, %c1_i32_30 : i32
      %c1_i32_31 = arith.constant 1 : i32
      %110 = arith.subi %c1_i32_31, %9 : i32
      %c8_i32_32 = arith.constant 8 : i32
      %111 = arith.muli %109, %c8_i32_32 : i32
      %112 = tpu.assume_multiple %111, 8 : i32
      %c0_i32_33 = arith.constant 0 : i32
      %c0_i32_34 = arith.constant 0 : i32
      %113 = tpu.memref_slice %arg2[%arg0, %112, %c0_i32_33, %c0_i32_34] : memref<2x18x24x128xbf16, #tpu.memory_space<any>> -> memref<1x10x24x128xbf16, #tpu.memory_space<any>>
      %114 = tpu.memref_squeeze %113 : memref<1x10x24x128xbf16, #tpu.memory_space<any>> -> memref<10x24x128xbf16, #tpu.memory_space<any>>
      %c0_i32_35 = arith.constant 0 : i32
      %c0_i32_36 = arith.constant 0 : i32
      %c0_i32_37 = arith.constant 0 : i32
      %115 = tpu.memref_slice %arg7[%110, %c0_i32_35, %c0_i32_36, %c0_i32_37] : memref<2x10x24x128xbf16, #tpu.memory_space<vmem>> -> memref<1x10x24x128xbf16, #tpu.memory_space<vmem>>
      %116 = tpu.memref_squeeze %115 : memref<1x10x24x128xbf16, #tpu.memory_space<vmem>> -> memref<10x24x128xbf16, #tpu.memory_space<vmem>>
      %117 = tpu.memref_slice %arg8[%110] : memref<2x!tpu.dma_semaphore, #tpu.memory_space<semaphore_mem>> -> memref<1x!tpu.dma_semaphore, #tpu.memory_space<semaphore_mem>>
      %118 = tpu.memref_squeeze %117 : memref<1x!tpu.dma_semaphore, #tpu.memory_space<semaphore_mem>> -> memref<!tpu.dma_semaphore, #tpu.memory_space<semaphore_mem>>
      tpu.enqueue_dma source(%114 : memref<10x24x128xbf16, #tpu.memory_space<any>>) target(%116 : memref<10x24x128xbf16, #tpu.memory_space<vmem>>) target_semaphore(%118 : memref<!tpu.dma_semaphore, #tpu.memory_space<semaphore_mem>>)
    } else {
    }
    %c8_i32 = arith.constant 8 : i32
    %17 = arith.muli %arg1, %c8_i32 : i32
    %18 = tpu.assume_multiple %17, 8 : i32
    %c0_i32_8 = arith.constant 0 : i32
    %c0_i32_9 = arith.constant 0 : i32
    %19 = tpu.memref_slice %arg2[%arg0, %18, %c0_i32_8, %c0_i32_9] : memref<2x18x24x128xbf16, #tpu.memory_space<any>> -> memref<1x10x24x128xbf16, #tpu.memory_space<any>>
    %20 = tpu.memref_squeeze %19 : memref<1x10x24x128xbf16, #tpu.memory_space<any>> -> memref<10x24x128xbf16, #tpu.memory_space<any>>
    %c0_i32_10 = arith.constant 0 : i32
    %c0_i32_11 = arith.constant 0 : i32
    %c0_i32_12 = arith.constant 0 : i32
    %21 = tpu.memref_slice %arg7[%9, %c0_i32_10, %c0_i32_11, %c0_i32_12] : memref<2x10x24x128xbf16, #tpu.memory_space<vmem>> -> memref<1x10x24x128xbf16, #tpu.memory_space<vmem>>
    %22 = tpu.memref_squeeze %21 : memref<1x10x24x128xbf16, #tpu.memory_space<vmem>> -> memref<10x24x128xbf16, #tpu.memory_space<vmem>>
    %23 = tpu.memref_slice %arg8[%9] : memref<2x!tpu.dma_semaphore, #tpu.memory_space<semaphore_mem>> -> memref<1x!tpu.dma_semaphore, #tpu.memory_space<semaphore_mem>>
    %24 = tpu.memref_squeeze %23 : memref<1x!tpu.dma_semaphore, #tpu.memory_space<semaphore_mem>> -> memref<!tpu.dma_semaphore, #tpu.memory_space<semaphore_mem>>
    tpu.wait_dma2 semaphore(%24 : memref<!tpu.dma_semaphore, #tpu.memory_space<semaphore_mem>>) src(%20 : memref<10x24x128xbf16, #tpu.memory_space<any>>) dst(%22 : memref<10x24x128xbf16, #tpu.memory_space<vmem>>)
    %c0 = arith.constant 0 : index
    %c0_13 = arith.constant 0 : index
    %c0_14 = arith.constant 0 : index
    %25 = vector.load %arg3[%c0, %c0_13, %c0_14] : memref<3x3x128xf32, #tpu.memory_space<vmem>>, vector<3x3x128xf32>
    %26 = arith.index_cast %9 : i32 to index
    %c0_15 = arith.constant 0 : index
    %c0_16 = arith.constant 0 : index
    %c0_17 = arith.constant 0 : index
    %27 = vector.load %arg7[%26, %c0_15, %c0_16, %c0_17] : memref<2x10x24x128xbf16, #tpu.memory_space<vmem>>, vector<1x8x24x128xbf16>
    %28 = vector.shape_cast %27 : vector<1x8x24x128xbf16> to vector<8x24x128xbf16>
    %29 = arith.extf %28 : vector<8x24x128xbf16> to vector<8x24x128xf32>
    %30 = vector.extract_strided_slice %29 {offsets = [0, 0, 0], sizes = [8, 16, 128], strides = [1, 1, 1]} : vector<8x24x128xf32> to vector<8x16x128xf32>
    %31 = vector.extract_strided_slice %25 {offsets = [0, 0, 0], sizes = [1, 1, 128], strides = [1, 1, 1]} : vector<3x3x128xf32> to vector<1x1x128xf32>
    %32 = vector.shape_cast %31 : vector<1x1x128xf32> to vector<128xf32>
    %33 = vector.shape_cast %32 : vector<128xf32> to vector<1x1x128xf32>
    %34 = vector.broadcast %33 : vector<1x1x128xf32> to vector<8x16x128xf32>
    %35 = arith.mulf %30, %34 : vector<8x16x128xf32>
    %36 = vector.extract_strided_slice %29 {offsets = [0, 1, 0], sizes = [8, 16, 128], strides = [1, 1, 1]} : vector<8x24x128xf32> to vector<8x16x128xf32>
    %37 = vector.extract_strided_slice %25 {offsets = [0, 1, 0], sizes = [1, 1, 128], strides = [1, 1, 1]} : vector<3x3x128xf32> to vector<1x1x128xf32>
    %38 = vector.shape_cast %37 : vector<1x1x128xf32> to vector<128xf32>
    %39 = vector.shape_cast %38 : vector<128xf32> to vector<1x1x128xf32>
    %40 = vector.broadcast %39 : vector<1x1x128xf32> to vector<8x16x128xf32>
    %41 = arith.mulf %36, %40 : vector<8x16x128xf32>
    %42 = vector.extract_strided_slice %29 {offsets = [0, 2, 0], sizes = [8, 16, 128], strides = [1, 1, 1]} : vector<8x24x128xf32> to vector<8x16x128xf32>
    %43 = vector.extract_strided_slice %25 {offsets = [0, 2, 0], sizes = [1, 1, 128], strides = [1, 1, 1]} : vector<3x3x128xf32> to vector<1x1x128xf32>
    %44 = vector.shape_cast %43 : vector<1x1x128xf32> to vector<128xf32>
    %45 = vector.shape_cast %44 : vector<128xf32> to vector<1x1x128xf32>
    %46 = vector.broadcast %45 : vector<1x1x128xf32> to vector<8x16x128xf32>
    %47 = arith.mulf %42, %46 : vector<8x16x128xf32>
    %48 = arith.index_cast %9 : i32 to index
    %c1 = arith.constant 1 : index
    %c0_18 = arith.constant 0 : index
    %c0_19 = arith.constant 0 : index
    %49 = vector.load %arg7[%48, %c1, %c0_18, %c0_19] : memref<2x10x24x128xbf16, #tpu.memory_space<vmem>>, vector<1x8x24x128xbf16>
    %50 = vector.shape_cast %49 : vector<1x8x24x128xbf16> to vector<8x24x128xbf16>
    %51 = arith.extf %50 : vector<8x24x128xbf16> to vector<8x24x128xf32>
    %52 = vector.extract_strided_slice %51 {offsets = [0, 0, 0], sizes = [8, 16, 128], strides = [1, 1, 1]} : vector<8x24x128xf32> to vector<8x16x128xf32>
    %53 = vector.extract_strided_slice %25 {offsets = [1, 0, 0], sizes = [1, 1, 128], strides = [1, 1, 1]} : vector<3x3x128xf32> to vector<1x1x128xf32>
    %54 = vector.shape_cast %53 : vector<1x1x128xf32> to vector<128xf32>
    %55 = vector.shape_cast %54 : vector<128xf32> to vector<1x1x128xf32>
    %56 = vector.broadcast %55 : vector<1x1x128xf32> to vector<8x16x128xf32>
    %57 = arith.mulf %52, %56 : vector<8x16x128xf32>
    %58 = vector.extract_strided_slice %51 {offsets = [0, 1, 0], sizes = [8, 16, 128], strides = [1, 1, 1]} : vector<8x24x128xf32> to vector<8x16x128xf32>
    %59 = vector.extract_strided_slice %25 {offsets = [1, 1, 0], sizes = [1, 1, 128], strides = [1, 1, 1]} : vector<3x3x128xf32> to vector<1x1x128xf32>
    %60 = vector.shape_cast %59 : vector<1x1x128xf32> to vector<128xf32>
    %61 = vector.shape_cast %60 : vector<128xf32> to vector<1x1x128xf32>
    %62 = vector.broadcast %61 : vector<1x1x128xf32> to vector<8x16x128xf32>
    %63 = arith.mulf %58, %62 : vector<8x16x128xf32>
    %64 = vector.extract_strided_slice %51 {offsets = [0, 2, 0], sizes = [8, 16, 128], strides = [1, 1, 1]} : vector<8x24x128xf32> to vector<8x16x128xf32>
    %65 = vector.extract_strided_slice %25 {offsets = [1, 2, 0], sizes = [1, 1, 128], strides = [1, 1, 1]} : vector<3x3x128xf32> to vector<1x1x128xf32>
    %66 = vector.shape_cast %65 : vector<1x1x128xf32> to vector<128xf32>
    %67 = vector.shape_cast %66 : vector<128xf32> to vector<1x1x128xf32>
    %68 = vector.broadcast %67 : vector<1x1x128xf32> to vector<8x16x128xf32>
    %69 = arith.mulf %64, %68 : vector<8x16x128xf32>
    %70 = arith.index_cast %9 : i32 to index
    %c2 = arith.constant 2 : index
    %c0_20 = arith.constant 0 : index
    %c0_21 = arith.constant 0 : index
    %71 = vector.load %arg7[%70, %c2, %c0_20, %c0_21] : memref<2x10x24x128xbf16, #tpu.memory_space<vmem>>, vector<1x8x24x128xbf16>
    %72 = vector.shape_cast %71 : vector<1x8x24x128xbf16> to vector<8x24x128xbf16>
    %73 = arith.extf %72 : vector<8x24x128xbf16> to vector<8x24x128xf32>
    %74 = vector.extract_strided_slice %73 {offsets = [0, 0, 0], sizes = [8, 16, 128], strides = [1, 1, 1]} : vector<8x24x128xf32> to vector<8x16x128xf32>
    %75 = vector.extract_strided_slice %25 {offsets = [2, 0, 0], sizes = [1, 1, 128], strides = [1, 1, 1]} : vector<3x3x128xf32> to vector<1x1x128xf32>
    %76 = vector.shape_cast %75 : vector<1x1x128xf32> to vector<128xf32>
    %77 = vector.shape_cast %76 : vector<128xf32> to vector<1x1x128xf32>
    %78 = vector.broadcast %77 : vector<1x1x128xf32> to vector<8x16x128xf32>
    %79 = arith.mulf %74, %78 : vector<8x16x128xf32>
    %80 = vector.extract_strided_slice %73 {offsets = [0, 1, 0], sizes = [8, 16, 128], strides = [1, 1, 1]} : vector<8x24x128xf32> to vector<8x16x128xf32>
    %81 = vector.extract_strided_slice %25 {offsets = [2, 1, 0], sizes = [1, 1, 128], strides = [1, 1, 1]} : vector<3x3x128xf32> to vector<1x1x128xf32>
    %82 = vector.shape_cast %81 : vector<1x1x128xf32> to vector<128xf32>
    %83 = vector.shape_cast %82 : vector<128xf32> to vector<1x1x128xf32>
    %84 = vector.broadcast %83 : vector<1x1x128xf32> to vector<8x16x128xf32>
    %85 = arith.mulf %80, %84 : vector<8x16x128xf32>
    %86 = vector.extract_strided_slice %73 {offsets = [0, 2, 0], sizes = [8, 16, 128], strides = [1, 1, 1]} : vector<8x24x128xf32> to vector<8x16x128xf32>
    %87 = vector.extract_strided_slice %25 {offsets = [2, 2, 0], sizes = [1, 1, 128], strides = [1, 1, 1]} : vector<3x3x128xf32> to vector<1x1x128xf32>
    %88 = vector.shape_cast %87 : vector<1x1x128xf32> to vector<128xf32>
    %89 = vector.shape_cast %88 : vector<128xf32> to vector<1x1x128xf32>
    %90 = vector.broadcast %89 : vector<1x1x128xf32> to vector<8x16x128xf32>
    %91 = arith.mulf %86, %90 : vector<8x16x128xf32>
    %92 = arith.addf %35, %41 : vector<8x16x128xf32>
    %93 = arith.addf %92, %47 : vector<8x16x128xf32>
    %94 = arith.addf %93, %57 : vector<8x16x128xf32>
    %95 = arith.addf %94, %63 : vector<8x16x128xf32>
    %96 = arith.addf %95, %69 : vector<8x16x128xf32>
    %97 = arith.addf %96, %79 : vector<8x16x128xf32>
    %98 = arith.addf %97, %85 : vector<8x16x128xf32>
    %99 = arith.addf %98, %91 : vector<8x16x128xf32>
    %100 = vector.shape_cast %99 : vector<8x16x128xf32> to vector<128x128xf32>
    %101 = arith.truncf %100 : vector<128x128xf32> to vector<128x128xbf16>
    %c0_22 = arith.constant 0 : index
    %c0_23 = arith.constant 0 : index
    %102 = vector.load %arg5[%c0_22, %c0_23] : memref<128x128xbf16, #tpu.memory_space<vmem>>, vector<128x128xbf16>
    %cst = arith.constant dense<0.000000e+00> : vector<128x128xf32>
    %103 = tpu.matmul %101, %102, %cst {dimension_numbers = #tpu.dot_dimension_numbers<[1], [0], [0], [1], [0, 0, 1, 1], [], []>} : vector<128x128xbf16>, vector<128x128xbf16>, vector<128x128xf32> -> vector<128x128xf32>
    %c0_24 = arith.constant 0 : index
    %c0_25 = arith.constant 0 : index
    %104 = vector.load %arg4[%c0_24, %c0_25] : memref<1x128xf32, #tpu.memory_space<vmem>>, vector<1x128xf32>
    %105 = vector.broadcast %104 : vector<1x128xf32> to vector<128x128xf32>
    %106 = arith.addf %103, %105 : vector<128x128xf32>
    %107 = vector.shape_cast %106 : vector<128x128xf32> to vector<1x8x16x128xf32>
    %c0_26 = arith.constant 0 : index
    %c0_27 = arith.constant 0 : index
    %c0_28 = arith.constant 0 : index
    %c0_29 = arith.constant 0 : index
    %108 = vector.load %arg6[%c0_26, %c0_27, %c0_28, %c0_29] : memref<1x8x16x128xf32, #tpu.memory_space<vmem>>, vector<1x8x16x128xf32>
    tpu.vector_store %arg6[%c0_26, %c0_27, %c0_28, %c0_29], %107 {strides = array<i32>} : memref<1x8x16x128xf32, #tpu.memory_space<vmem>>, vector<1x8x16x128xf32>,
    return
  }
  func.func @transform_1(%arg0: i32, %arg1: i32) -> (i32, i32, i32) {
    %c0_i32 = arith.constant 0 : i32
    %c0_i32_0 = arith.constant 0 : i32
    %c0_i32_1 = arith.constant 0 : i32
    %c0_i32_2 = arith.constant 0 : i32
    return %c0_i32, %c0_i32_0, %c0_i32_1 : i32, i32, i32
  }
  func.func @transform_2(%arg0: i32, %arg1: i32) -> (i32, i32) {
    %c0_i32 = arith.constant 0 : i32
    %c0_i32_0 = arith.constant 0 : i32
    %c0_i32_1 = arith.constant 0 : i32
    return %c0_i32, %c0_i32_0 : i32, i32
  }
  func.func @transform_3(%arg0: i32, %arg1: i32) -> (i32, i32) {
    %c0_i32 = arith.constant 0 : i32
    %c0_i32_0 = arith.constant 0 : i32
    %c0_i32_1 = arith.constant 0 : i32
    return %c0_i32, %c0_i32_0 : i32, i32
  }
  func.func @transform_4(%arg0: i32, %arg1: i32) -> (i32, i32, i32, i32) {
    %c0_i32 = arith.constant 0 : i32
    %c0_i32_0 = arith.constant 0 : i32
    %c0_i32_1 = arith.constant 0 : i32
    return %arg0, %arg1, %c0_i32, %c0_i32_0 : i32, i32, i32, i32
  }
}

</mosaic_0001>

<bundles_post_ra>
// kernel: tpu_custom_call.1
= control target key start
LH: loop header
LB: loop body
LE: loop exit
PB: predicated region body
PF: predicated region fallthrough
CT: control target
= control target key end

     0   :  { %s3133_s0 = inlined_call_operand.hbm [shape: bf16[2,18,24,128], index: 0, kind: input, shape index: {}]   ;;  %s3134_s1 = inlined_call_operand.hbm [shape: f32[3,3,128], index: 1, kind: input, shape index: {}]   ;;  %s3135_s2 = inlined_call_operand.vmem [shape: f32[1,128], index: 2, kind: input, shape index: {}]   ;;  %s3136_s3 = inlined_call_operand.hbm [shape: bf16[128,128], index: 3, kind: input, shape index: {}]   ;;  %s3137_s4 = inlined_call_operand.hbm [shape: f32[2,16,16,128], index: 4, kind: output, shape index: {}]  }
   0x1   :  { %3149 = sst [smem:[#allocation25_spill]] %s3134_s1 }
   0x2   :  { %3150 = sst [smem:[#allocation26_spill]] %s3136_s3 }
   0x3   :  { %9 = vsyncpa [#allocation5], 0 }
   0x4   :  { %10 = vsyncpa [#allocation8], 0 }
   0x5   :  { %11 = vsyncpa [#allocation6], 0 }
   0x6   :  { %13 = vsyncpa [#allocation6 + $0x1], 0  ;;  %s2278_s15 = smov 0   ;;  %s2280_s16 = smov 0  }
   0x7   :  { %s2282_s17 = smov 0   ;;  %s2284_s18 = smov 0  }
   0x8   :  { %s2286_s19 = smov 0   ;;  %s2288_s20 = smov 0  }
   0x9   :  { %s2290_s21 = smov 0   ;;  %s2292_s22 = smov 0  }
   0xa LB: > { %3151 = sst [smem:[#allocation20_spill]] %s2235_s20  ;;  %s1587_s23 = sadd.s32 4294967295, %s2243_s22   ;;  %s2243_s22 = sphi %s2292_s22, %s19_s22   ;;  %s2239_s21 = sphi %s2290_s21, %s3175_s21   ;;  %s2235_s20 = sphi %s2288_s20, %s3174_s20   ;;  %s2231_s19 = sphi %s2286_s19, %s3173_s19   ;;  %s2227_s18 = sphi %s2284_s18, %s3172_s18   ;;  %s2223_s17 = sphi %s2282_s17, %s3178_s17   ;;  %s2219_s16 = sphi %s2280_s16, %s3177_s16   ;;  %s2215_s15 = sphi %s2278_s15, %s3176_s15  }
   0xb   : > { %3152 = sst [smem:[#allocation21_spill]] %s2239_s21  ;;  %s1588_s24 = sadd.s32 4294967294, %s2243_s22  }
   0xc   : > { %s28_s25 = sadd.s32 1, %s2235_s20  ;;  %s31_s26 = sadd.s32 1, %s2239_s21 }
   0xd   : > { %p29_p0 = scmp.ge.s32.totalorder %s28_s25, 2  ;;  %s103_s27 = sadd.s32 1, %s2223_s17 }
   0xe   : > { %p113_p1 = scmp.ne.s32.totalorder %s2223_s17, %s2219_s16  ;;  %p114_p2 = scmp.eq.s32.totalorder %s1587_s23, 3 }
   0xf   : > { %s3180_s25 = smov (%p29_p0, %s28_s25), 0  ;;  %s3182_s26 = smov (!%p29_p0, %s31_s26), %s2239_s21 }
  0x10   : > { %3153 = sst [smem:[#allocation22_spill]] %s3180_s25  ;;  %s99_s28 = ssub.s32 %s2235_s20, %s3180_s25 }
  0x11   : > { %p2330_p3 = por %p114_p2, %p113_p1  ;;  %p33_p4 = scmp.ge.s32.totalorder %s3182_s26, 2 }
  0x12   : > { %p119_p5 = scmp.ne.s32.totalorder %s2219_s16, %s2215_s15  ;;  %p120_p6 = scmp.eq.s32.totalorder %s1588_s24, 3 }
  0x13   : > { %s3154_s29 = scalar_select %p2330_p3, 1, 0 }
  0x14   : > { %p1589_p7 = scmp.ge.s32.totalorder %s2243_s22, 1  ;;  %s3184_s26 = smov (%p33_p4, %s3182_s26), 0 }
  0x15   : > { %3155 = sst [smem:[#allocation23_spill]] %s3184_s26  ;;  %p2339_p8 = por %p120_p6, %p119_p5 }
  0x16   : > { %p127_p9 = scmp.lt.s32.totalorder %s2243_s22, 5  ;;  %s98_s5 = ssub.s32 %s2239_s21, %s3184_s26 }
  0x17   : > { %s3156_s30 = scalar_select %p2339_p8, 1, 0 }
  0x18   : > { %s100_s6 = sor.u32 %s99_s28, %s98_s5  ;;  %p2346_p10 = pnand %p1589_p7, %p127_p9 }
  0x19   : > { %p101_p11 = scmp.eq.s32.totalorder %s100_s6, 0  ;;  %p2350_p12 = scmp.eq.s32.totalorder %s1587_s23, 0 }
  0x1a   : > { %s3157_s7 = scalar_select %p2346_p10, 1, 0 }
  0x1b   : > { %s3158_s8 = scalar_select %p2350_p12, 1, 0 }
  0x1c   : > { %p1929_p13 = pneg %p2346_p10  ;;  %s2245_s10 = smov [#allocation4]  }
  0x1d   : > { %s2357_s9 = scalar_select %p101_p11, %s2223_s17, %s103_s27  }
  0x1e   : > { %s139_s11 = sshll.u32 %s2245_s10, 4  ;;  %p2361_p0 = pnand %p2350_p12, %p1929_p13  ;;  %s140_s11 = int_to_ptr.vmem [resolvable:$true] %s139_s11 }
  0x1f   : > { %3159 = sst [smem:[#allocation24_spill]] %s2357_s9  ;;  %s3161_s1 = sld [smem:[#allocation25_spill]] }
  0x20   : > { %p2028_p2 = pneg %p2361_p0 }
  0x25   : > { %s2026_s23 = scalar_lea.hbm %s3161_s1, 192 }
  0x26   : > { %p2027_p1 = scmp.ne.s32.totalorder %s3161_s1, %s2026_s23  ;;  %p2033_p6 = scmp.lt.u32.totalorder %s2026_s23, %s3161_s1 }
  0x28   : > { %p2029_p4 = pnand %p2028_p2, %p2027_p1 }
  0x2a   : > { %p2030_p5 = pneg %p2029_p4 }
  0x2c   : > { %p2035_p7 = pnand %p2033_p6, %p2030_p5 }
  0x2e   : > { %2038 = shalt.err (!%p2035_p7)
}
  0x2f   : > { %s2039_s6 = scalar_lea.vmem %s140_s11, 192  ;;  %p2047_p8 = scmp.lt.s32.totalorder %s140_s11, %s140_s11 }
  0x30   : > { %p2040_p9 = scmp.ne.s32.totalorder %s140_s11, %s2039_s6  ;;  %p2048_p3 = scmp.lt.s32.totalorder %s2039_s6, %s2039_s6 }
  0x32   : > { %p2042_p11 = pnand %p2040_p9, %p2028_p2  ;;  %p2049_p12 = por %p2048_p3, %p2047_p8 }
  0x34   : > { %p2043_p13 = pneg %p2042_p11 }
  0x36   : > { %p2050_p10 = pnand %p2049_p12, %p2043_p13 }
  0x38   : > { %2053 = shalt.err (!%p2050_p10)
}
  0x39   : > { %s2246_s10 = smov 64   ;;  %s2247_s13 = smov 4  }
  0x3a   : > { %1932 = dma.hbm_to_vmem [thread:$0]  (!%p2361_p0), %s3161_s1, 192, %s140_s11, [#allocation5], %s2246_s10, %s2246_s10, %s2247_s13  }
  0x3b   : > { %s2248_s24 = smov [#allocation7]   ;;  %s3162_s3 = sld [smem:[#allocation26_spill]] }
  0x3c   : > { %s155_s28 = sshll.u32 %s2248_s24, 4  ;;  %s156_s28 = int_to_ptr.vmem [resolvable:$true] %s155_s28 }
  0x41   : > { %s2054_s26 = scalar_lea.hbm %s3162_s3, 1024 }
  0x42   : > { %p2055_p3 = scmp.ne.s32.totalorder %s3162_s3, %s2054_s26  ;;  %p2061_p12 = scmp.lt.u32.totalorder %s2054_s26, %s3162_s3 }
  0x44   : > { %p2057_p8 = pnand %p2055_p3, %p2028_p2 }
  0x46   : > { %p2058_p10 = pneg %p2057_p8 }
  0x48   : > { %p2063_p1 = pnand %p2061_p12, %p2058_p10 }
  0x4a   : > { %2066 = shalt.err (!%p2063_p1)
}
  0x4b   : > { %s2067_s11 = scalar_lea.vmem %s156_s28, 1024  ;;  %p2075_p7 = scmp.lt.s32.totalorder %s156_s28, %s156_s28 }
  0x4c   : > { %p2068_p4 = scmp.ne.s32.totalorder %s156_s28, %s2067_s11  ;;  %p2076_p9 = scmp.lt.s32.totalorder %s2067_s11, %s2067_s11 }
  0x4e   : > { %p2070_p5 = pnand %p2068_p4, %p2028_p2  ;;  %p2077_p11 = por %p2076_p9, %p2075_p7 }
  0x50   : > { %p2071_p6 = pneg %p2070_p5 }
  0x52   : > { %p2078_p13 = pnand %p2077_p11, %p2071_p6 }
  0x54   : > { %2081 = shalt.err (!%p2078_p13)
}
  0x55   : > { %1935 = dma.hbm_to_vmem [thread:$0]  (!%p2361_p0), %s3162_s3, 1024, %s156_s28, [#allocation8], %s2246_s10, %s2246_s10, %s2247_s13  }
  0x56   : > { %p3163_p3 = scmp.ne.s32.totalorder %s3157_s7, 0 }
  0x57   : > { %p3164_p8 = scmp.ne.s32.totalorder (!%p3163_p3), %s3158_s8, 0 }
  0x58   : > { %171 = sbr.rel (%p3163_p3) target bundleno = 556 (0x22c), region = 32 }
  0x5f   : > { %2200 = dma.done.wait (%p3164_p8), [#allocation5], 192  }
  0x60   : > { %2202 = vsyncadd (%p3164_p8), [#allocation5], 4294967104 }
  0x61   : > { %2204 = dma.done.wait (%p3164_p8), [#allocation8], 1024  }
  0x62   : > { %2206 = vsyncadd (%p3164_p8), [#allocation8], 4294966272  ;;  %s3146_s20 = sand.u32 1, %s2219_s16   ;;  %p1944_p0 = scmp.eq.s32.totalorder %s2227_s18, 0 }
  0x63   : > { %s2420_s21 = sshll.u32 %s3146_s20, 7  ;;  %s1673_s26 = smul.u32 3456, %s2231_s19 }
  0x64   : > { %p196_p2 = scmp.lt.s32.totalorder %s2227_s18, 0  ;;  %s2249_s8 = smov [#allocation2]  }
  0x65   : > { %s216_s10 = scalar_lea.hbm %s3133_s0, %s1673_s26  ;;  %s224_s13 = sshll.u32 %s2249_s8, 4  ;;  %s2428_s13 = int_to_ptr.vmem [resolvable:$true] %s224_s13 }
  0x66   : > { %s197_s23 = ssub.s32 0, %s2227_s18  ;;  %s2082_s24 = scalar_lea.hbm %s216_s10, 1920 }
  0x67   : > { %p2083_p10 = scmp.ne.s32.totalorder %s216_s10, %s2082_s24  ;;  %s3148_s5 = scalar_lea.hbm %s3133_s0, 6912 }
  0x68   : > { %p2087_p4 = scmp.lt.u32.totalorder %s216_s10, %s3133_s0  ;;  %p2088_p5 = scmp.lt.u32.totalorder %s3148_s5, %s2082_s24 }
  0x69   : > { %p2084_p12 = pnand %p2083_p10, %p1944_p0  ;;  %p2090_p7 = scmp.lt.u32.totalorder %s2082_s24, %s216_s10 }
  0x6a   : > { %p2089_p6 = por %p2088_p5, %p2087_p4 }
  0x6b   : > { %p2085_p1 = pneg %p2084_p12 }
  0x6c   : > { %p2091_p9 = por %p2090_p7, %p2089_p6 }
  0x6e   : > { %p2092_p11 = pnand %p2091_p9, %p2085_p1 }
  0x70   : > { %2095 = shalt.err (!%p2092_p11)  }
  0x71   : > { %s2096_s26 = scalar_lea.vmem %s2428_s13, 1920  ;;  %s3147_s7 = scalar_lea.vmem %s2428_s13, 3840 }
  0x72   : > { %p2097_p13 = scmp.ne.s32.totalorder %s2428_s13, %s2096_s26  ;;  %p2103_p10 = scmp.lt.s32.totalorder %s2428_s13, %s2428_s13 }
  0x73   : > { %p2104_p12 = scmp.lt.s32.totalorder %s3147_s7, %s2096_s26 }
  0x74   : > { %p2098_p3 = pnand %p2097_p13, %p1944_p0 }
  0x75   : > { %p2105_p4 = por %p2104_p12, %p2103_p10 }
  0x76   : > { %p2099_p8 = pneg %p2098_p3 }
  0x78   : > { %p2106_p5 = pnand %p2105_p4, %p2099_p8 }
  0x7a   : > { %2109 = shalt.err (!%p2106_p5)  }
  0x7b   : > { %1924 = dma.hbm_to_vmem [thread:$0]  (%p1944_p0), %s216_s10, 1920, %s2428_s13, [#allocation3] }
  0x7c   : > { %s1596_s12 = smin.u32 %s2227_s18, %s197_s23  ;;  %s228_s8 = sadd.s32 1, %s2227_s18 }
  0x7d   : > { %s199_s24 = sand.u32 1, %s1596_s12   ;;  %s1512_s27 = smul.u32 24, %s2227_s18 }
  0x7e   : > { %s200_s28 = ssub.s32 0, %s199_s24  ;;  %s1513_s11 = smul.u32 54, %s2231_s19 }
  0x7f   : > { %s3186_s28 = smov (!%p196_p2, %s200_s28), %s199_s24  ;;  %p2463_p6 = scmp.lt.s32.totalorder %s228_s8, 2 }
  0x80   : > { %p1598_p1 = scmp.lt.s32.totalorder %s3186_s28, 0  ;;  %s206_s6 = sadd.s32 2, %s3186_s28 }
  0x81   : > { %s1514_s14 = sadd.s32 %s1513_s11, %s1512_s27 }
  0x82   : > { %s3188_s6 = smov (!%p1598_p1, %s206_s6), %s3186_s28  ;;  %s1602_s23 = sshll.u32 %s1514_s14, 6 }
  0x83   : > { %s233_s10 = ssub.s32 1, %s3188_s6  ;;  %s1516_s20 = scalar_lea.hbm %s3133_s0, %s1602_s23 }
  0x84   : > { %s1674_s24 = smul.u32 120, %s233_s10  ;;  %s1517_s7 = scalar_lea.hbm %s1516_s20, 1536 }
  0x85   : > { %s243_s28 = scalar_lea.sflag [#allocation3], %s233_s10  ;;  %s2138_s3 = scalar_lea.hbm %s1516_s20, 3456 }
  0x86   : > { %s242_s5 = scalar_lea.vmem [#allocation2], %s1674_s24  ;;  %p2111_p0 = scmp.ne.s32.totalorder %s1517_s7, %s2138_s3 }
  0x87   : > { %s251_s1 = sshll.u32 %s242_s5, 4  ;;  %p2115_p9 = scmp.lt.u32.totalorder %s1517_s7, %s3133_s0  ;;  %s252_s1 = int_to_ptr.vmem [resolvable:$true] %s251_s1 }
  0x88   : > { %p2112_p2 = pnand %p2111_p0, %p2463_p6  ;;  %s3166_s14 = scalar_lea.hbm %s3133_s0, 6912 }
  0x89   : > { %p2116_p11 = scmp.lt.u32.totalorder %s3166_s14, %s2138_s3  ;;  %p2118_p3 = scmp.lt.u32.totalorder %s2138_s3, %s1517_s7 }
  0x8a   : > { %p2113_p7 = pneg %p2112_p2 }
  0x8b   : > { %p2117_p13 = por %p2116_p11, %p2115_p9 }
  0x8d   : > { %p2119_p8 = por %p2118_p3, %p2117_p13 }
  0x8f   : > { %p2120_p10 = pnand %p2119_p8, %p2113_p7 }
  0x91   : > { %2123 = shalt.err (!%p2120_p10)  }
  0x92   : > { %s2124_s5 = scalar_lea.vmem %s252_s1, 1920  ;;  %p2131_p1 = scmp.lt.s32.totalorder %s252_s1, %s2428_s13 }
  0x93   : > { %p2125_p12 = scmp.ne.s32.totalorder %s252_s1, %s2124_s5  ;;  %s3167_s9 = scalar_lea.vmem %s2428_s13, 3840 }
  0x94   : > { %p2132_p0 = scmp.lt.s32.totalorder %s3167_s9, %s2124_s5 }
  0x95   : > { %p2126_p4 = pnand %p2125_p12, %p2463_p6 }
  0x96   : > { %p2133_p2 = por %p2132_p0, %p2131_p1 }
  0x97   : > { %p2127_p5 = pneg %p2126_p4 }
  0x99   : > { %p2134_p9 = pnand %p2133_p2, %p2127_p5 }
  0x9b   : > { %2137 = shalt.err (!%p2134_p9)  }
  0x9c   : > { %1926 = dma.hbm_to_vmem [thread:$0]  (%p2463_p6), %s1517_s7, 1920, %s252_s1, %s243_s28 }
  0x9d   : > { %s2488_s3 = scalar_lea.vmem [#allocation9], %s2420_s21  ;;  %s256_s20 = scalar_lea.sflag [#allocation3], %s3188_s6 }
  0x9e   : > { %2207 = dma.done.wait %s256_s20, 1920 }
  0x9f   : > { %2208 = vsyncadd %s256_s20, 4294965376  ;;  %v316_v0 = vlaneseq  ;;  %v2018_v1 = vld [vmem:[#allocation7] sm:$0xff]   ;;  %v2019_v2 = vld [vmem:[#allocation7 + $0x8] sm:$0xff]   ;;  %s1675_s13 = smul.u32 120, %s3188_s6  ;;  %vm670_vm0 = vcmask 1046528   ;;  %vm767_vm1 = vcmask 1045504  }
  0xa0   : > { %1867 = vmatprep.subr.bf16.mxu0 %v2018_v1  ;;  %1899 = vmatprep.subr.bf16.mxu1 %v2018_v1  ;;  %v2020_v4 = vld [vmem:[#allocation7 + $0x10] sm:$0xff]   ;;  %v2021_v8 = vld [vmem:[#allocation7 + $0x18] sm:$0xff]   ;;  %v2022_v24 = vld [vmem:[#allocation7 + $0x20] sm:$0xff]   ;;  %s1676_s6 = sshll.u32 %s2227_s18, 4  ;;  %s1667_s25 = sshll.u32 %s2231_s19, 5 }
  0xa1   : > { %v317_v3 = vshrl.u32 %v316_v0, 7  ;;  %1868 = vmatpush3.bf16.msra.mxu0 %v2018_v1  ;;  %1907 = vmatpush3.bf16.msra.mxu1 %v2018_v1  ;;  %v262_v9 = vld [vmem:[#allocation4] sm:$0x7]  ;;  %v263_v10 = vld [vmem:[#allocation4 + $0x4] sm:$0x7]  ;;  %s2492_s1 = scalar_lea.vmem [#allocation2], %s1675_s13  ;;  %s1462_s10 = sadd.s32 %s1676_s6, %s1667_s25 }
  0xa2   : > { %1869 = vmatprep.subr.bf16.mxu0 %v2019_v2  ;;  %1900 = vmatprep.subr.bf16.mxu1 %v2019_v2  ;;  %v1678_v11 = vld [vmem:[%s2492_s1] sm:$0xff]   ;;  %v1817_v12 = vld [vmem:[%s2492_s1 + $0x8] sm:$0xff]   ;;  %v1828_v20 = vld [vmem:[%s2492_s1 + $0x10] sm:$0xff]   ;;  %s1668_s23 = sshll.u32 %s1462_s10, 7  ;;  %s1465_s26 = sshll.u32 %s2488_s3, 4  ;;  %s3074_s26 = int_to_ptr.vmem [resolvable:$true] %s1465_s26 }
  0xa3   : > { %v318_v5 = vsub.s32 0, %v317_v3  ;;  %v338_v6 = vsub.s32 1, %v317_v3  ;;  %v366_v7 = vsub.s32 2, %v317_v3  ;;  %v1606_v16 = vld [vmem:[%s2492_s1 + $0xc] sm:$0xf]  ;;  %v1679_v17 = vunpack.c.l.bf16 %v1678_v11  ;;  %v1839_v34 = vld [vmem:[%s2492_s1 + $0x18] sm:$0xff]   ;;  %s3072_s18 = scalar_lea.hbm %s3137_s4, %s1668_s23 }
  0xa4   : > { %v1680_v18 = vunpack.c.h.bf16 %v1678_v11  ;;  %v1683_v19 = vunpack.c.l.bf16 %v1817_v12  ;;  %v419_v22 = vunpack.c.l.bf16 %v1606_v16  ;;  %v2510_v27 = vunpack.c.l.bf16 %v1828_v20  ;;  %v264_v29 = vld [vmem:[#allocation4 + $0x8] sm:$0x7]  ;;  %v2023_v44 = vld [vmem:[#allocation7 + $0x28] sm:$0xff]   ;;  %v2024_v61 = vld [vmem:[#allocation7 + $0x30] sm:$0xff]   ;;  %s3168_s19 = sand.u32 1, %s2219_s16   ;;  %s2139_s8 = scalar_lea.vmem %s3074_s26, 2048 }
  0xa5   : > { %1870 = vmatpush3.bf16.msra.mxu0 %v2019_v2  ;;  %1908 = vmatpush3.bf16.msra.mxu1 %v2019_v2  ;;  %v2496_v13 = vrot.slane %v262_v9, %v318_v5  ;;  %v2498_v14 = vrot.slane %v262_v9, %v338_v6  ;;  %v2500_v15 = vrot.slane %v262_v9, %v366_v7  ;;  %v2512_v28 = vunpack.c.h.bf16 %v1828_v20  ;;  %v1840_v39 = vld [vmem:[%s2492_s1 + $0x20] sm:$0xff]   ;;  %s3081_s28 = scalar_lea.sflag [#allocation6], %s3168_s19  ;;  %p2140_p6 = scmp.ne.s32.totalorder %s3074_s26, %s2139_s8 }
  0xa6   : > { %1871 = vmatprep.subr.bf16.mxu0 %v2020_v4  ;;  %1901 = vmatprep.subr.bf16.mxu1 %v2020_v4  ;;  %v2504_v21 = vrot.slane %v263_v10, %v318_v5  ;;  %v2506_v23 = vrot.slane %v263_v10, %v338_v6  ;;  %v2529_v40 = vunpack.c.h.bf16 %v1817_v12  ;;  %v2534_v43 = vrot.slane %v263_v10, %v366_v7  ;;  %p3169_p7 = scmp.ne.s32.totalorder %s3154_s29, 0  ;;  %s2250_s27 = smov [#allocation9]  }
  0xa7   : > { %v320_v25 = vmul.f32 %v1679_v17, %v2496_v13  ;;  %v321_v26 = vmul.f32 %v1680_v18, %v2496_v13  ;;  %v340_v30 = vmul.f32 %v1679_v17, %v2498_v14  ;;  %v341_v31 = vmul.f32 %v1680_v18, %v2498_v14  ;;  %s2143_s11 = sshll.u32 %s2250_s27, 4  ;;  %s2144_s11 = int_to_ptr.vmem [resolvable:$false] %s2143_s11 }
  0xa8   : > { %v342_v32 = vmul.f32 %v1683_v19, %v2498_v14  ;;  %v368_v33 = vmul.f32 %v1679_v17, %v2500_v15  ;;  %v369_v35 = vmul.f32 %v1680_v18, %v2500_v15  ;;  %v370_v36 = vmul.f32 %v1683_v19, %v2500_v15  ;;  %v2025_v17 = vld [vmem:[#allocation7 + $0x38] sm:$0xff]   ;;  %p2141_p11 = pnand %p2140_p6, %p3169_p7  ;;  %s2145_s14 = scalar_lea.vmem %s2144_s11, 4096 }
  0xa9   : > { %1872 = vmatpush3.bf16.msra.mxu0 %v2020_v4  ;;  %1909 = vmatpush3.bf16.msra.mxu1 %v2020_v4  ;;  %v2522_v37 = vmul.f32 %v2504_v21, %v419_v22  ;;  %v2526_v38 = vmul.f32 %v2510_v27, %v2504_v21  ;;  %v467_v41 = vmul.f32 %v2506_v23, %v419_v22  ;;  %v2538_v46 = vunpack.c.l.bf16 %v1839_v34  ;;  %p2146_p3 = scmp.lt.s32.totalorder %s3074_s26, %s2144_s11  ;;  %p2147_p8 = scmp.lt.s32.totalorder %s2145_s14, %s2139_s8 }
  0xaa   : > { %1873 = vmatprep.subr.bf16.mxu0 %v2021_v8  ;;  %1902 = vmatprep.subr.bf16.mxu1 %v2021_v8  ;;  %v468_v42 = vmul.f32 %v2510_v27, %v2506_v23  ;;  %v469_v45 = vmul.f32 %v2512_v28, %v2506_v23  ;;  %v2540_v47 = vrot.slane %v264_v29, %v318_v5  ;;  %v2545_v50 = vunpack.c.h.bf16 %v1839_v34  ;;  %p2142_p13 = pneg %p2141_p11 }
  0xab   : > { %v2542_v48 = vrot.slane %v264_v29, %v338_v6  ;;  %v495_v49 = vmul.f32 %v2534_v43, %v419_v22  ;;  %v2547_v51 = vunpack.c.l.bf16 %v1840_v39  ;;  %v2549_v52 = vrot.slane %v264_v29, %v366_v7  ;;  %p2148_p10 = por %p2147_p8, %p2146_p3 }
  0xac   : > { %v496_v53 = vmul.f32 %v2510_v27, %v2534_v43  ;;  %v497_v54 = vmul.f32 %v2512_v28, %v2534_v43  ;;  %v2557_v55 = vmul.f32 %v2538_v46, %v2540_v47  ;;  %v671_v60 = vrot.slane %v340_v30, 1 }
  0xad   : > { %1874 = vmatpush3.bf16.msra.mxu0 %v2021_v8  ;;  %1910 = vmatpush3.bf16.msra.mxu1 %v2021_v8  ;;  %v594_v56 = vmul.f32 %v2538_v46, %v2542_v48  ;;  %v595_v57 = vmul.f32 %v2545_v50, %v2542_v48  ;;  %v596_v58 = vmul.f32 %v2547_v51, %v2542_v48  ;;  %v672_v63 = vrot.slane %v341_v31, 1  ;;  %p2149_p12 = pnand %p2148_p10, %p2142_p13 }
  0xae   : > { %1875 = vmatprep.subr.bf16.mxu0 %v2022_v24  ;;  %1903 = vmatprep.subr.bf16.mxu1 %v2022_v24  ;;  %v622_v59 = vmul.f32 %v2538_v46, %v2549_v52  ;;  %v623_v62 = vmul.f32 %v2545_v50, %v2549_v52  ;;  %v674_v0 = vrot.slane %v342_v32, 1  ;;  %v768_v1 = vrot.slane %v368_v33, 2  ;;  %v1822_v32 = vld [vmem:[%s2492_s1 + $0x30] sm:$0xff]  }
  0xaf   : > { %v769_v2 = vrot.slane %v369_v35, 2  ;;  %v771_v3 = vrot.slane %v370_v36, 2  ;;  %v880_v4 = vrot.slane %v467_v41, 1  ;;  %v881_v5 = vrot.slane %v468_v42, 1  ;;  %v1823_v42 = vld [vmem:[%s2492_s1 + $0x38] sm:$0xff]  }
  0xb0   : > { %v624_v6 = vmul.f32 %v2547_v51, %v2549_v52  ;;  %v673_v7 = vsel %vm670_vm0, %v671_v60, %v672_v63  ;;  %v675_v8 = vsel %vm670_vm0, %v672_v63, %v674_v0  ;;  %v883_v9 = vrot.slane %v469_v45, 1 }
  0xb1   : > { %1876 = vmatpush3.bf16.msra.mxu0 %v2022_v24  ;;  %1911 = vmatpush3.bf16.msra.mxu1 %v2022_v24  ;;  %v2573_v10 = vunpack.c.h.bf16 %v1840_v39  ;;  %v727_v11 = vadd.f32 %v673_v7, %v320_v25  ;;  %v728_v12 = vadd.f32 %v675_v8, %v321_v26  ;;  %v770_v16 = vsel %vm767_vm1, %v768_v1, %v769_v2 }
  0xb2   : > { %1877 = vmatprep.subr.bf16.mxu0 %v2023_v44  ;;  %1904 = vmatprep.subr.bf16.mxu1 %v2023_v44  ;;  %v772_v18 = vsel %vm767_vm1, %v769_v2, %v771_v3  ;;  %v976_v19 = vrot.slane %v495_v49, 2  ;;  %v977_v20 = vrot.slane %v496_v53, 2  ;;  %v979_v22 = vrot.slane %v497_v54, 2 }
  0xb3   : > { %v824_v24 = vadd.f32 %v770_v16, %v727_v11  ;;  %v825_v29 = vadd.f32 %v772_v18, %v728_v12  ;;  %v882_v30 = vsel %vm670_vm0, %v880_v4, %v881_v5  ;;  %v1088_v31 = vrot.slane %v594_v56, 1  ;;  %v1845_v11 = vld [vmem:[%s2492_s1 + $0x48] sm:$0xff]  }
  0xb4   : > { %v884_v25 = vsel %vm670_vm0, %v881_v5, %v883_v9  ;;  %v1089_v26 = vrot.slane %v595_v57, 1  ;;  %v1091_v33 = vrot.slane %v596_v58, 1  ;;  %v1184_v34 = vrot.slane %v622_v59, 2  ;;  %v1834_v57 = vld [vmem:[%s2492_s1 + $0x40] sm:$0xff]  }
  0xb5   : > { %1878 = vmatpush3.bf16.msra.mxu0 %v2023_v44  ;;  %1912 = vmatpush3.bf16.msra.mxu1 %v2023_v44  ;;  %v840_v35 = vadd.f32 %v824_v24, %v2522_v37  ;;  %v841_v36 = vadd.f32 %v825_v29, %v2526_v38  ;;  %v1185_v39 = vrot.slane %v623_v62, 2  ;;  %v1187_v41 = vrot.slane %v624_v6, 2 }
  0xb6   : > { %1879 = vmatprep.subr.bf16.mxu0 %v2024_v61  ;;  %1905 = vmatprep.subr.bf16.mxu1 %v2024_v61  ;;  %v978_v44 = vsel %vm767_vm1, %v976_v19, %v977_v20  ;;  %v980_v45 = vsel %vm767_vm1, %v977_v20, %v979_v22  ;;  %v2585_v49 = vunpack.c.l.bf16 %v1822_v32  ;;  %v2587_v53 = vunpack.c.h.bf16 %v1822_v32 }
  0xb7   : > { %v575_v54 = vmul.f32 %v2545_v50, %v2540_v47  ;;  %v936_v56 = vadd.f32 %v882_v30, %v840_v35  ;;  %v937_v37 = vadd.f32 %v884_v25, %v841_v36  ;;  %v1090_v38 = vsel %vm670_vm0, %v1088_v31, %v1089_v26 }
  0xb8   : > { %v1092_v58 = vsel %vm670_vm0, %v1089_v26, %v1091_v33  ;;  %v1186_v59 = vsel %vm767_vm1, %v1184_v34, %v1185_v39  ;;  %v1188_v60 = vsel %vm767_vm1, %v1185_v39, %v1187_v41  ;;  %v2598_v0 = vunpack.c.h.bf16 %v1823_v42 }
  0xb9   : > { %1880 = vmatpush3.bf16.msra.mxu0 %v2024_v61  ;;  %1913 = vmatpush3.bf16.msra.mxu1 %v2024_v61  ;;  %v2596_v61 = vunpack.c.l.bf16 %v1823_v42  ;;  %v1032_v62 = vadd.f32 %v978_v44, %v936_v56  ;;  %v1033_v63 = vadd.f32 %v980_v45, %v937_v37  ;;  %v328_v1 = vmul.f32 %v2585_v49, %v2496_v13 }
  0xba   : > { %1881 = vmatprep.subr.bf16.mxu0 %v2025_v17  ;;  %1906 = vmatprep.subr.bf16.mxu1 %v2025_v17  ;;  %v329_v2 = vmul.f32 %v2587_v53, %v2496_v13  ;;  %v352_v3 = vmul.f32 %v2585_v49, %v2498_v14  ;;  %v353_v4 = vmul.f32 %v2587_v53, %v2498_v14  ;;  %v2608_v5 = vunpack.c.l.bf16 %v1834_v57 }
  0xbb   : > { %v1048_v6 = vadd.f32 %v1032_v62, %v2557_v55  ;;  %v1049_v7 = vadd.f32 %v1033_v63, %v575_v54  ;;  %v354_v8 = vmul.f32 %v2596_v61, %v2498_v14  ;;  %v380_v9 = vmul.f32 %v2585_v49, %v2500_v15  ;;  %v1846_v55 = vld [vmem:[%s2492_s1 + $0x50] sm:$0xff]  }
  0xbc   : > { %v381_v12 = vmul.f32 %v2587_v53, %v2500_v15  ;;  %v382_v16 = vmul.f32 %v2596_v61, %v2500_v15  ;;  %v455_v18 = vmul.f32 %v2598_v0, %v2504_v21  ;;  %v456_v22 = vmul.f32 %v2608_v5, %v2504_v21 }
  0xbd   : > { %1882 = vmatpush3.bf16.msra.mxu0 %v2025_v17  ;;  %1914 = vmatpush3.bf16.msra.mxu1 %v2025_v17  ;;  %v2620_v17 = vunpack.c.h.bf16 %v1834_v57  ;;  %v1144_v19 = vadd.f32 %v1090_v38, %v1048_v6  ;;  %v1145_v20 = vadd.f32 %v1092_v58, %v1049_v7  ;;  %v479_v24 = vmul.f32 %v2598_v0, %v2506_v23 }
  0xbe   : > { %v480_v29 = vmul.f32 %v2608_v5, %v2506_v23  ;;  %v507_v31 = vmul.f32 %v2598_v0, %v2534_v43  ;;  %v2635_v32 = vunpack.c.l.bf16 %v1845_v11  ;;  %v2637_v33 = vunpack.c.h.bf16 %v1845_v11 }
  0xbf   : > { %v481_v30 = vmul.f32 %v2620_v17, %v2506_v23  ;;  %v1240_v25 = vadd.f32 %v1186_v59, %v1144_v19  ;;  %v1241_v26 = vadd.f32 %v1188_v60, %v1145_v20  ;;  %v2639_v34 = vunpack.c.l.bf16 %v1846_v55 }
  0xc0   : > { %v508_v35 = vmul.f32 %v2608_v5, %v2534_v43  ;;  %v509_v36 = vmul.f32 %v2620_v17, %v2534_v43  ;;  %v2645_v39 = vunpack.c.h.bf16 %v1846_v55  ;;  %v606_v41 = vmul.f32 %v2635_v32, %v2542_v48 }
  0xc1   : > { %v1256_v42 = vpack.c.bf16 %v1241_v26, %v1240_v25  ;;  %v607_v44 = vmul.f32 %v2637_v33, %v2542_v48  ;;  %v608_v45 = vmul.f32 %v2639_v34, %v2542_v48  ;;  %v634_v54 = vmul.f32 %v2635_v32, %v2549_v52 }
  0xc2   : > { %v635_v56 = vmul.f32 %v2637_v33, %v2549_v52  ;;  %v691_v37 = vrot.slane %v352_v3, 1  ;;  %v692_v38 = vrot.slane %v353_v4, 1  ;;  %v694_v57 = vrot.slane %v354_v8, 1 }
  0xc3   : > { %1883 = vmatprep.mubr.bf16.mxu0 %v1256_v42  ;;  %v788_v58 = vrot.slane %v380_v9, 2  ;;  %v789_v59 = vrot.slane %v381_v12, 2  ;;  %v791_v60 = vrot.slane %v382_v16, 2  ;;  %v900_v62 = vrot.slane %v479_v24, 1 }
  0xc4   : > { %v693_v63 = vsel %vm670_vm0, %v691_v37, %v692_v38  ;;  %v695_v6 = vsel %vm670_vm0, %v692_v38, %v694_v57  ;;  %v901_v7 = vrot.slane %v480_v29, 1  ;;  %v903_v11 = vrot.slane %v481_v30, 1 }
  0xc5   : > { %v735_v55 = vadd.f32 %v693_v63, %v328_v1  ;;  %v736_v19 = vadd.f32 %v695_v6, %v329_v2  ;;  %v790_v20 = vsel %vm767_vm1, %v788_v58, %v789_v59  ;;  %v792_v25 = vsel %vm767_vm1, %v789_v59, %v791_v60 }
  0xc6   : > { %v636_v3 = vmul.f32 %v2639_v34, %v2549_v52  ;;  %v902_v4 = vsel %vm670_vm0, %v900_v62, %v901_v7  ;;  %v996_v8 = vrot.slane %v507_v31, 2  ;;  %v997_v9 = vrot.slane %v508_v35, 2 }
  0xc7   : > { %v832_v12 = vadd.f32 %v790_v20, %v735_v55  ;;  %v833_v16 = vadd.f32 %v792_v25, %v736_v19  ;;  %v999_v24 = vrot.slane %v509_v36, 2  ;;  %v1108_v26 = vrot.slane %v606_v41, 1 }
  0xc8   : > { %v904_v29 = vsel %vm670_vm0, %v901_v7, %v903_v11  ;;  %v1109_v30 = vrot.slane %v607_v44, 1  ;;  %v1111_v1 = vrot.slane %v608_v45, 1  ;;  %v1204_v2 = vrot.slane %v634_v54, 2  ;;  %v1841_v7 = vld [vmem:[%s2492_s1 + $0x28] sm:$0xff]  }
  0xc9   : > { %v582_v42 = vmul.f32 %v2635_v32, %v2540_v47  ;;  %v848_v37 = vadd.f32 %v832_v12, %v455_v18  ;;  %v849_v38 = vadd.f32 %v833_v16, %v456_v22  ;;  %v1205_v57 = vrot.slane %v635_v56, 2 }
  0xca   : > { %v583_v58 = vmul.f32 %v2637_v33, %v2540_v47  ;;  %v998_v31 = vsel %vm767_vm1, %v996_v8, %v997_v9  ;;  %v1000_v35 = vsel %vm767_vm1, %v997_v9, %v999_v24  ;;  %v1207_v36 = vrot.slane %v636_v3, 2 }
  0xcb   : > { %v944_v41 = vadd.f32 %v902_v4, %v848_v37  ;;  %v945_v59 = vadd.f32 %v904_v29, %v849_v38  ;;  %v1110_v44 = vsel %vm670_vm0, %v1108_v26, %v1109_v30  ;;  %v1112_v45 = vsel %vm670_vm0, %v1109_v30, %v1111_v1 }
  0xcc   : > { %v1206_v54 = vsel %vm767_vm1, %v1204_v2, %v1205_v57  ;;  %v1208_v18 = vsel %vm767_vm1, %v1205_v57, %v1207_v36  ;;  %v322_v22 = vmul.f32 %v2529_v40, %v2496_v13  ;;  %v323_v56 = vmul.f32 %v2510_v27, %v2496_v13 }
  0xcd   : > { %v1040_v60 = vadd.f32 %v998_v31, %v944_v41  ;;  %v1041_v62 = vadd.f32 %v1000_v35, %v945_v59  ;;  %v343_v63 = vmul.f32 %v2529_v40, %v2498_v14  ;;  %v344_v6 = vmul.f32 %v2510_v27, %v2498_v14 }
  0xce   : > { %v345_v11 = vmul.f32 %v2512_v28, %v2498_v14  ;;  %v371_v55 = vmul.f32 %v2529_v40, %v2500_v15  ;;  %v372_v19 = vmul.f32 %v2510_v27, %v2500_v15  ;;  %v373_v20 = vmul.f32 %v2512_v28, %v2500_v15 }
  0xcf   : > { %v1056_v25 = vadd.f32 %v1040_v60, %v582_v42  ;;  %v1057_v3 = vadd.f32 %v1041_v62, %v583_v58  ;;  %v449_v4 = vmul.f32 %v2538_v46, %v2504_v21  ;;  %v450_v8 = vmul.f32 %v2545_v50, %v2504_v21 }
  0xd0   : > { %v470_v9 = vmul.f32 %v2538_v46, %v2506_v23  ;;  %v471_v40 = vmul.f32 %v2545_v50, %v2506_v23  ;;  %v472_v27 = vmul.f32 %v2547_v51, %v2506_v23  ;;  %v2702_v12 = vunpack.c.l.bf16 %v1841_v7 }
  0xd1   : > { %v1152_v28 = vadd.f32 %v1110_v44, %v1056_v25  ;;  %v1153_v16 = vadd.f32 %v1112_v45, %v1057_v3  ;;  %v498_v24 = vmul.f32 %v2538_v46, %v2534_v43  ;;  %v2706_v26 = vunpack.c.h.bf16 %v1841_v7 }
  0xd2   : > { %v499_v29 = vmul.f32 %v2545_v50, %v2534_v43  ;;  %v500_v30 = vmul.f32 %v2547_v51, %v2534_v43  ;;  %v597_v1 = vmul.f32 %v2573_v10, %v2542_v48  ;;  %v598_v2 = vmul.f32 %v2702_v12, %v2542_v48 }
  0xd3   : > { %v1248_v42 = vadd.f32 %v1206_v54, %v1152_v28  ;;  %v1249_v37 = vadd.f32 %v1208_v18, %v1153_v16  ;;  %v599_v38 = vmul.f32 %v2706_v26, %v2542_v48  ;;  %v625_v57 = vmul.f32 %v2573_v10, %v2549_v52 }
  0xd4   : > { %v626_v58 = vmul.f32 %v2702_v12, %v2549_v52  ;;  %v676_v31 = vrot.slane %v343_v63, 1  ;;  %v677_v35 = vrot.slane %v344_v6, 1  ;;  %v679_v36 = vrot.slane %v345_v11, 1 }
  0xd5   : > { %v1260_v41 = vpack.c.bf16 %v1249_v37, %v1248_v42  ;;  %v773_v59 = vrot.slane %v371_v55, 2  ;;  %v774_v44 = vrot.slane %v372_v19, 2  ;;  %v776_v45 = vrot.slane %v373_v20, 2 }
  0xd6   : > { %v678_v60 = vsel %vm670_vm0, %v676_v31, %v677_v35  ;;  %v680_v54 = vsel %vm670_vm0, %v677_v35, %v679_v36  ;;  %v885_v18 = vrot.slane %v470_v9, 1  ;;  %v886_v62 = vrot.slane %v471_v40, 1 }
  0xd7   : > { %1891 = vmatprep.mubr.bf16.mxu1 %v1260_v41  ;;  %v729_v7 = vadd.f32 %v678_v60, %v322_v22  ;;  %v730_v25 = vadd.f32 %v680_v54, %v323_v56  ;;  %v775_v3 = vsel %vm767_vm1, %v773_v59, %v774_v44  ;;  %v777_v28 = vsel %vm767_vm1, %v774_v44, %v776_v45 }
  0xd8   : > { %v627_v63 = vmul.f32 %v2706_v26, %v2549_v52  ;;  %v888_v6 = vrot.slane %v472_v27, 1  ;;  %v981_v11 = vrot.slane %v498_v24, 2  ;;  %v982_v55 = vrot.slane %v499_v29, 2 }
  0xd9   : > { %v826_v19 = vadd.f32 %v775_v3, %v729_v7  ;;  %v827_v20 = vadd.f32 %v777_v28, %v730_v25  ;;  %v984_v16 = vrot.slane %v500_v30, 2  ;;  %v1093_v42 = vrot.slane %v597_v1, 1 }
  0xda   : > { %v887_v9 = vsel %vm670_vm0, %v885_v18, %v886_v62  ;;  %v889_v40 = vsel %vm670_vm0, %v886_v62, %v888_v6  ;;  %v1094_v22 = vrot.slane %v598_v2, 1  ;;  %v1096_v56 = vrot.slane %v599_v38, 1  ;;  %v1847_v6 = vld [vmem:[%s2492_s1 + $0x58] sm:$0xff]  }
  0xdb   : > { %v576_v37 = vmul.f32 %v2573_v10, %v2540_v47  ;;  %v842_v31 = vadd.f32 %v826_v19, %v449_v4  ;;  %v843_v35 = vadd.f32 %v827_v20, %v450_v8  ;;  %v1189_v36 = vrot.slane %v625_v57, 2 }
  0xdc   : > { %v983_v27 = vsel %vm767_vm1, %v981_v11, %v982_v55  ;;  %v985_v24 = vsel %vm767_vm1, %v982_v55, %v984_v16  ;;  %v1190_v29 = vrot.slane %v626_v58, 2  ;;  %v1192_v41 = vrot.slane %v627_v63, 2 }
  0xdd   : > { %v577_v30 = vmul.f32 %v2702_v12, %v2540_v47  ;;  %v938_v1 = vadd.f32 %v887_v9, %v842_v31  ;;  %v939_v59 = vadd.f32 %v889_v40, %v843_v35  ;;  %v1095_v2 = vsel %vm670_vm0, %v1093_v42, %v1094_v22 }
  0xde   : > { %v1097_v38 = vsel %vm670_vm0, %v1094_v22, %v1096_v56  ;;  %v1191_v4 = vsel %vm767_vm1, %v1189_v36, %v1190_v29  ;;  %v330_v8 = vmul.f32 %v2598_v0, %v2496_v13  ;;  %v331_v57 = vmul.f32 %v2608_v5, %v2496_v13 }
  0xdf   : > { %v1034_v58 = vadd.f32 %v983_v27, %v938_v1  ;;  %v1035_v44 = vadd.f32 %v985_v24, %v939_v59  ;;  %v1193_v45 = vsel %vm767_vm1, %v1190_v29, %v1192_v41  ;;  %v355_v60 = vmul.f32 %v2598_v0, %v2498_v14 }
  0xe0   : > { %v356_v54 = vmul.f32 %v2608_v5, %v2498_v14  ;;  %v357_v18 = vmul.f32 %v2620_v17, %v2498_v14  ;;  %v383_v62 = vmul.f32 %v2598_v0, %v2500_v15  ;;  %v384_v7 = vmul.f32 %v2608_v5, %v2500_v15 }
  0xe1   : > { %v1050_v25 = vadd.f32 %v1034_v58, %v576_v37  ;;  %v1051_v3 = vadd.f32 %v1035_v44, %v577_v30  ;;  %v385_v28 = vmul.f32 %v2620_v17, %v2500_v15  ;;  %v457_v63 = vmul.f32 %v2635_v32, %v2504_v21 }
  0xe2   : > { %v458_v11 = vmul.f32 %v2637_v33, %v2504_v21  ;;  %v482_v55 = vmul.f32 %v2635_v32, %v2506_v23  ;;  %v483_v19 = vmul.f32 %v2637_v33, %v2506_v23  ;;  %v484_v20 = vmul.f32 %v2639_v34, %v2506_v23 }
  0xe3   : > { %v1146_v16 = vadd.f32 %v1095_v2, %v1050_v25  ;;  %v1147_v42 = vadd.f32 %v1097_v38, %v1051_v3  ;;  %v510_v9 = vmul.f32 %v2635_v32, %v2534_v43  ;;  %v511_v40 = vmul.f32 %v2637_v33, %v2534_v43 }
  0xe4   : > { %v512_v22 = vmul.f32 %v2639_v34, %v2534_v43  ;;  %v2773_v56 = vunpack.c.l.bf16 %v1847_v6  ;;  %v2775_v37 = vunpack.c.h.bf16 %v1847_v6  ;;  %v696_v31 = vrot.slane %v355_v60, 1 }
  0xe5   : > { %v1242_v35 = vadd.f32 %v1191_v4, %v1146_v16  ;;  %v1243_v36 = vadd.f32 %v1193_v45, %v1147_v42  ;;  %v609_v27 = vmul.f32 %v2645_v39, %v2542_v48  ;;  %v637_v24 = vmul.f32 %v2645_v39, %v2549_v52 }
  0xe6   : > { %v610_v29 = vmul.f32 %v2773_v56, %v2542_v48  ;;  %v611_v41 = vmul.f32 %v2775_v37, %v2542_v48  ;;  %v638_v30 = vmul.f32 %v2773_v56, %v2549_v52  ;;  %v697_v1 = vrot.slane %v356_v54, 1 }
  0xe7   : > { %v1257_v59 = vpack.c.bf16 %v1243_v36, %v1242_v35  ;;  %v699_v2 = vrot.slane %v357_v18, 1  ;;  %v793_v38 = vrot.slane %v383_v62, 2  ;;  %v794_v4 = vrot.slane %v384_v7, 2 }
  0xe8   : > { %v698_v58 = vsel %vm670_vm0, %v696_v31, %v697_v1  ;;  %v796_v44 = vrot.slane %v385_v28, 2  ;;  %v905_v45 = vrot.slane %v482_v55, 1  ;;  %v906_v60 = vrot.slane %v483_v19, 1 }
  0xe9   : > { %1884 = vmatmul.mubr.bf16.vlgmr.msra.gmra.mrb[0].mxu0 %v1257_v59  ;;  %v700_v25 = vsel %vm670_vm0, %v697_v1, %v699_v2  ;;  %v737_v3 = vadd.f32 %v698_v58, %v330_v8  ;;  %v795_v6 = vsel %vm767_vm1, %v793_v38, %v794_v4  ;;  %v908_v16 = vrot.slane %v484_v20, 1 }
  0xea   : > { %v639_v42 = vmul.f32 %v2775_v37, %v2549_v52  ;;  %v738_v54 = vadd.f32 %v700_v25, %v331_v57  ;;  %v797_v18 = vsel %vm767_vm1, %v794_v4, %v796_v44  ;;  %v1001_v62 = vrot.slane %v510_v9, 2 }
  0xeb   : > { %v834_v7 = vadd.f32 %v795_v6, %v737_v3  ;;  %v907_v31 = vsel %vm670_vm0, %v905_v45, %v906_v60  ;;  %v1002_v28 = vrot.slane %v511_v40, 2  ;;  %v1004_v55 = vrot.slane %v512_v22, 2 }
  0xec   : > { %v835_v19 = vadd.f32 %v797_v18, %v738_v54  ;;  %v1113_v35 = vrot.slane %v609_v27, 1  ;;  %v1114_v36 = vrot.slane %v610_v29, 1  ;;  %v1116_v1 = vrot.slane %v611_v41, 1 }
  0xed   : > { %v584_v8 = vmul.f32 %v2645_v39, %v2540_v47  ;;  %v850_v20 = vadd.f32 %v834_v7, %v457_v63  ;;  %v909_v59 = vsel %vm670_vm0, %v906_v60, %v908_v16  ;;  %v1209_v2 = vrot.slane %v637_v24, 2 }
  0xee   : > { %v585_v57 = vmul.f32 %v2773_v56, %v2540_v47  ;;  %v851_v9 = vadd.f32 %v835_v19, %v458_v11  ;;  %v1003_v38 = vsel %vm767_vm1, %v1001_v62, %v1002_v28  ;;  %v1210_v4 = vrot.slane %v638_v30, 2 }
  0xef   : > { %v946_v40 = vadd.f32 %v907_v31, %v850_v20  ;;  %v1005_v22 = vsel %vm767_vm1, %v1002_v28, %v1004_v55  ;;  %v1115_v27 = vsel %vm670_vm0, %v1113_v35, %v1114_v36  ;;  %v1212_v29 = vrot.slane %v639_v42, 2 }
  0xf0   : > { %v947_v41 = vadd.f32 %v909_v59, %v851_v9  ;;  %v1117_v58 = vsel %vm670_vm0, %v1114_v36, %v1116_v1  ;;  %v324_v63 = vmul.f32 %v2538_v46, %v2496_v13  ;;  %v325_v24 = vmul.f32 %v2545_v50, %v2496_v13 }
  0xf1   : > { %v1042_v44 = vadd.f32 %v1003_v38, %v946_v40  ;;  %v1211_v11 = vsel %vm767_vm1, %v1209_v2, %v1210_v4  ;;  %v346_v30 = vmul.f32 %v2538_v46, %v2498_v14  ;;  %v347_v45 = vmul.f32 %v2545_v50, %v2498_v14 }
  0xf2   : > { %v1043_v60 = vadd.f32 %v1005_v22, %v947_v41  ;;  %v1213_v25 = vsel %vm767_vm1, %v1210_v4, %v1212_v29  ;;  %v348_v3 = vmul.f32 %v2547_v51, %v2498_v14  ;;  %v374_v6 = vmul.f32 %v2538_v46, %v2500_v15 }
  0xf3   : > { %v1058_v16 = vadd.f32 %v1042_v44, %v584_v8  ;;  %v375_v42 = vmul.f32 %v2545_v50, %v2500_v15  ;;  %v376_v54 = vmul.f32 %v2547_v51, %v2500_v15  ;;  %v451_v18 = vmul.f32 %v2573_v10, %v2504_v21 }
  0xf4   : > { %v1059_v62 = vadd.f32 %v1043_v60, %v585_v57  ;;  %v452_v7 = vmul.f32 %v2702_v12, %v2504_v21  ;;  %v473_v31 = vmul.f32 %v2573_v10, %v2506_v23  ;;  %v474_v46 = vmul.f32 %v2702_v12, %v2506_v23 }
  0xf5   : > { %v1154_v28 = vadd.f32 %v1115_v27, %v1058_v16  ;;  %v475_v50 = vmul.f32 %v2706_v26, %v2506_v23  ;;  %v501_v51 = vmul.f32 %v2573_v10, %v2534_v43  ;;  %v502_v55 = vmul.f32 %v2702_v12, %v2534_v43 }
  0xf6   : > { %v1155_v19 = vadd.f32 %v1117_v58, %v1059_v62  ;;  %v503_v35 = vmul.f32 %v2706_v26, %v2534_v43  ;;  %v600_v36 = vmul.f32 %v2585_v49, %v2542_v48  ;;  %v601_v1 = vmul.f32 %v2587_v53, %v2542_v48 }
  0xf7   : > { %v1250_v8 = vadd.f32 %v1211_v11, %v1154_v28  ;;  %v602_v20 = vmul.f32 %v2596_v61, %v2542_v48  ;;  %v628_v59 = vmul.f32 %v2585_v49, %v2549_v52  ;;  %v629_v2 = vmul.f32 %v2587_v53, %v2549_v52 }
  0xf8   : > { %v1251_v57 = vadd.f32 %v1213_v25, %v1155_v19  ;;  %v681_v9 = vrot.slane %v346_v30, 1  ;;  %v682_v38 = vrot.slane %v347_v45, 1  ;;  %v684_v4 = vrot.slane %v348_v3, 1 }
  0xf9   : > { %v778_v40 = vrot.slane %v374_v6, 2  ;;  %v779_v22 = vrot.slane %v375_v42, 2  ;;  %v781_v27 = vrot.slane %v376_v54, 2  ;;  %v890_v29 = vrot.slane %v473_v31, 1 }
  0xfa   : > { %v1261_v41 = vpack.c.bf16 %v1251_v57, %v1250_v8  ;;  %v683_v58 = vsel %vm670_vm0, %v681_v9, %v682_v38  ;;  %v685_v44 = vsel %vm670_vm0, %v682_v38, %v684_v4  ;;  %v891_v11 = vrot.slane %v474_v46, 1 }
  0xfb   : > { %v731_v60 = vadd.f32 %v683_v58, %v324_v63  ;;  %v732_v16 = vadd.f32 %v685_v44, %v325_v24  ;;  %v780_v62 = vsel %vm767_vm1, %v778_v40, %v779_v22  ;;  %v782_v28 = vsel %vm767_vm1, %v779_v22, %v781_v27 }
  0xfc   : > { %1892 = vmatmul.mubr.bf16.vlgmr.msra.gmra.mrb[0].mxu1 %v1261_v41  ;;  %v630_v30 = vmul.f32 %v2596_v61, %v2549_v52  ;;  %v893_v45 = vrot.slane %v475_v50, 1  ;;  %v986_v25 = vrot.slane %v501_v51, 2  ;;  %v987_v3 = vrot.slane %v502_v55, 2 }
  0xfd   : > { %v828_v6 = vadd.f32 %v780_v62, %v731_v60  ;;  %v829_v42 = vadd.f32 %v782_v28, %v732_v16  ;;  %v892_v54 = vsel %vm670_vm0, %v890_v29, %v891_v11  ;;  %v989_v31 = vrot.slane %v503_v35, 2 }
  0xfe   : > { %v894_v46 = vsel %vm670_vm0, %v891_v11, %v893_v45  ;;  %v1098_v63 = vrot.slane %v600_v36, 1  ;;  %v1099_v24 = vrot.slane %v601_v1, 1  ;;  %v1101_v19 = vrot.slane %v602_v20, 1  ;;  %v1848_v11 = vld [vmem:[%s2492_s1 + $0x60] sm:$0xff]  }
  0xff   : > { %v844_v8 = vadd.f32 %v828_v6, %v451_v18  ;;  %v845_v57 = vadd.f32 %v829_v42, %v452_v7  ;;  %v1194_v9 = vrot.slane %v628_v59, 2  ;;  %v988_v38 = vsel %vm767_vm1, %v986_v25, %v987_v3 }
 0x100   : > { %v990_v4 = vsel %vm767_vm1, %v987_v3, %v989_v31  ;;  %v1195_v50 = vrot.slane %v629_v2, 2  ;;  %v1197_v51 = vrot.slane %v630_v30, 2  ;;  %v578_v55 = vmul.f32 %v2585_v49, %v2540_v47  ;;  %v2883_v30 = vld [vmem:[%s2492_s1 + $0x68] sm:$0xff]  }
 0x101   : > { %v579_v35 = vmul.f32 %v2587_v53, %v2540_v47  ;;  %v940_v40 = vadd.f32 %v892_v54, %v844_v8  ;;  %v941_v36 = vadd.f32 %v894_v46, %v845_v57  ;;  %v1100_v1 = vsel %vm670_vm0, %v1098_v63, %v1099_v24 }
 0x102   : > { %v1102_v18 = vsel %vm670_vm0, %v1099_v24, %v1101_v19  ;;  %v332_v7 = vmul.f32 %v2635_v32, %v2496_v13  ;;  %v333_v20 = vmul.f32 %v2637_v33, %v2496_v13  ;;  %v1196_v22 = vsel %vm767_vm1, %v1194_v9, %v1195_v50 }
 0x103   : > { %v1036_v59 = vadd.f32 %v988_v38, %v940_v40  ;;  %v1037_v2 = vadd.f32 %v990_v4, %v941_v36  ;;  %v1198_v27 = vsel %vm767_vm1, %v1195_v50, %v1197_v51  ;;  %v358_v29 = vmul.f32 %v2635_v32, %v2498_v14 }
 0x104   : > { %v359_v41 = vmul.f32 %v2637_v33, %v2498_v14  ;;  %v360_v58 = vmul.f32 %v2639_v34, %v2498_v14  ;;  %v386_v44 = vmul.f32 %v2635_v32, %v2500_v15  ;;  %v387_v62 = vmul.f32 %v2637_v33, %v2500_v15 }
 0x105   : > { %v1052_v60 = vadd.f32 %v1036_v59, %v578_v55  ;;  %v1053_v16 = vadd.f32 %v1037_v2, %v579_v35  ;;  %v388_v28 = vmul.f32 %v2639_v34, %v2500_v15  ;;  %v459_v45 = vmul.f32 %v2645_v39, %v2504_v21 }
 0x106   : > { %v485_v25 = vmul.f32 %v2645_v39, %v2506_v23  ;;  %v486_v32 = vmul.f32 %v2773_v56, %v2506_v23  ;;  %v487_v3 = vmul.f32 %v2775_v37, %v2506_v23  ;;  %v513_v33 = vmul.f32 %v2645_v39, %v2534_v43 }
 0x107   : > { %v1148_v6 = vadd.f32 %v1100_v1, %v1052_v60  ;;  %v1149_v42 = vadd.f32 %v1102_v18, %v1053_v16  ;;  %v2895_v34 = vunpack.c.l.bf16 %v1848_v11  ;;  %v2897_v54 = vunpack.c.h.bf16 %v1848_v11 }
 0x108   : > { %v1811_v31 = vunpack.c.l.bf16 %v2883_v30  ;;  %v701_v46 = vrot.slane %v358_v29, 1  ;;  %v702_v63 = vrot.slane %v359_v41, 1  ;;  %v514_v8 = vmul.f32 %v2773_v56, %v2534_v43 }
 0x109   : > { %v1244_v24 = vadd.f32 %v1196_v22, %v1148_v6  ;;  %v1245_v19 = vadd.f32 %v1198_v27, %v1149_v42  ;;  %v515_v57 = vmul.f32 %v2775_v37, %v2534_v43  ;;  %v612_v9 = vmul.f32 %v2895_v34, %v2542_v48 }
 0x10a   : > { %v613_v38 = vmul.f32 %v2897_v54, %v2542_v48  ;;  %v614_v4 = vmul.f32 %v1811_v31, %v2542_v48  ;;  %v640_v50 = vmul.f32 %v2895_v34, %v2549_v52  ;;  %v641_v55 = vmul.f32 %v2897_v54, %v2549_v52 }
 0x10b   : > { %v1258_v51 = vpack.c.bf16 %v1245_v19, %v1244_v24  ;;  %v642_v35 = vmul.f32 %v1811_v31, %v2549_v52  ;;  %v703_v40 = vsel %vm670_vm0, %v701_v46, %v702_v63  ;;  %v704_v36 = vrot.slane %v360_v58, 1 }
 0x10c   : > { %v739_v1 = vadd.f32 %v703_v40, %v332_v7  ;;  %v798_v18 = vrot.slane %v386_v44, 2  ;;  %v799_v59 = vrot.slane %v387_v62, 2  ;;  %v801_v2 = vrot.slane %v388_v28, 2 }
 0x10d   : > { %1887 = vmatprep.mubr.bf16.mxu0 %v1258_v51  ;;  %v910_v22 = vrot.slane %v485_v25, 1  ;;  %v911_v27 = vrot.slane %v486_v32, 1  ;;  %v913_v29 = vrot.slane %v487_v3, 1  ;;  %v705_v41 = vsel %vm670_vm0, %v702_v63, %v704_v36 }
 0x10e   : > { %v800_v11 = vsel %vm767_vm1, %v798_v18, %v799_v59  ;;  %v1006_v60 = vrot.slane %v513_v33, 2  ;;  %v1007_v16 = vrot.slane %v514_v8, 2  ;;  %v460_v6 = vmul.f32 %v2773_v56, %v2504_v21 }
 0x10f   : > { %v740_v42 = vadd.f32 %v705_v41, %v333_v20  ;;  %v802_v58 = vsel %vm767_vm1, %v799_v59, %v801_v2  ;;  %v836_v7 = vadd.f32 %v800_v11, %v739_v1  ;;  %v912_v44 = vsel %vm670_vm0, %v910_v22, %v911_v27 }
 0x110   : > { %v914_v62 = vsel %vm670_vm0, %v911_v27, %v913_v29  ;;  %v1009_v28 = vrot.slane %v515_v57, 2  ;;  %v1118_v25 = vrot.slane %v612_v9, 1  ;;  %v1119_v31 = vrot.slane %v613_v38, 1 }
 0x111   : > { %v837_v32 = vadd.f32 %v802_v58, %v740_v42  ;;  %v852_v3 = vadd.f32 %v836_v7, %v459_v45  ;;  %v1121_v46 = vrot.slane %v614_v4, 1  ;;  %v1008_v33 = vsel %vm767_vm1, %v1006_v60, %v1007_v16 }
 0x112   : > { %v1214_v63 = vrot.slane %v640_v50, 2  ;;  %v1215_v24 = vrot.slane %v641_v55, 2  ;;  %v1217_v19 = vrot.slane %v642_v35, 2  ;;  %v586_v20 = vmul.f32 %v2895_v34, %v2540_v47 }
 0x113   : > { %v587_v8 = vmul.f32 %v2897_v54, %v2540_v47  ;;  %v853_v51 = vadd.f32 %v837_v32, %v460_v6  ;;  %v948_v40 = vadd.f32 %v912_v44, %v852_v3  ;;  %v1010_v57 = vsel %vm767_vm1, %v1007_v16, %v1009_v28 }
 0x114   : > { %v1120_v9 = vsel %vm670_vm0, %v1118_v25, %v1119_v31  ;;  %v1122_v45 = vsel %vm670_vm0, %v1119_v31, %v1121_v46  ;;  %v1216_v38 = vsel %vm767_vm1, %v1214_v63, %v1215_v24  ;;  %v1218_v55 = vsel %vm767_vm1, %v1215_v24, %v1217_v19 }
 0x115   : > { %v949_v4 = vadd.f32 %v914_v62, %v853_v51  ;;  %v1044_v50 = vadd.f32 %v1008_v33, %v948_v40  ;;  %v326_v35 = vmul.f32 %v2573_v10, %v2496_v13  ;;  %v327_v36 = vmul.f32 %v2702_v12, %v2496_v13 }
 0x116   : > { %v349_v1 = vmul.f32 %v2573_v10, %v2498_v14  ;;  %v350_v18 = vmul.f32 %v2702_v12, %v2498_v14  ;;  %v351_v59 = vmul.f32 %v2706_v26, %v2498_v14  ;;  %v377_v27 = vmul.f32 %v2573_v10, %v2500_v15 }
 0x117   : > { %v1045_v2 = vadd.f32 %v1010_v57, %v949_v4  ;;  %v1060_v22 = vadd.f32 %v1044_v50, %v586_v20  ;;  %v378_v29 = vmul.f32 %v2702_v12, %v2500_v15  ;;  %v379_v41 = vmul.f32 %v2706_v26, %v2500_v15 }
 0x118   : > { %v453_v11 = vmul.f32 %v2585_v49, %v2504_v21  ;;  %v454_v60 = vmul.f32 %v2587_v53, %v2504_v21  ;;  %v476_v16 = vmul.f32 %v2585_v49, %v2506_v23  ;;  %v477_v10 = vmul.f32 %v2587_v53, %v2506_v23 }
 0x119   : > { %v1061_v6 = vadd.f32 %v1045_v2, %v587_v8  ;;  %v1156_v42 = vadd.f32 %v1120_v9, %v1060_v22  ;;  %v478_v12 = vmul.f32 %v2596_v61, %v2506_v23  ;;  %v504_v26 = vmul.f32 %v2585_v49, %v2534_v43 }
 0x11a   : > { %v505_v58 = vmul.f32 %v2587_v53, %v2534_v43  ;;  %v506_v7 = vmul.f32 %v2596_v61, %v2534_v43  ;;  %v603_v44 = vmul.f32 %v2598_v0, %v2542_v48  ;;  %v604_v25 = vmul.f32 %v2608_v5, %v2542_v48 }
 0x11b   : > { %v1157_v62 = vadd.f32 %v1122_v45, %v1061_v6  ;;  %v1252_v28 = vadd.f32 %v1216_v38, %v1156_v42  ;;  %v605_v32 = vmul.f32 %v2620_v17, %v2542_v48  ;;  %v631_v49 = vmul.f32 %v2598_v0, %v2549_v52 }
 0x11c   : > { %v632_v53 = vmul.f32 %v2608_v5, %v2549_v52  ;;  %v686_v3 = vrot.slane %v349_v1, 1  ;;  %v687_v31 = vrot.slane %v350_v18, 1  ;;  %v689_v46 = vrot.slane %v351_v59, 1 }
 0x11d   : > { %v1253_v61 = vadd.f32 %v1218_v55, %v1157_v62  ;;  %v783_v33 = vrot.slane %v377_v27, 2  ;;  %v784_v63 = vrot.slane %v378_v29, 2  ;;  %v786_v19 = vrot.slane %v379_v41, 2 }
 0x11e   : > { %v688_v24 = vsel %vm670_vm0, %v686_v3, %v687_v31  ;;  %v895_v20 = vrot.slane %v476_v16, 1  ;;  %v896_v8 = vrot.slane %v477_v10, 1  ;;  %v690_v40 = vsel %vm670_vm0, %v687_v31, %v689_v46  ;;  %v1850_v46 = vld [vmem:[%s2492_s1 + $0x70] sm:$0xff]  }
 0x11f   : > { %v1262_v51 = vpack.c.bf16 %v1253_v61, %v1252_v28  ;;  %v733_v57 = vadd.f32 %v688_v24, %v326_v35  ;;  %v785_v9 = vsel %vm767_vm1, %v783_v33, %v784_v63  ;;  %v633_v45 = vmul.f32 %v2620_v17, %v2549_v52 }
 0x120   : > { %v734_v38 = vadd.f32 %v690_v40, %v327_v36  ;;  %v787_v4 = vsel %vm767_vm1, %v784_v63, %v786_v19  ;;  %v898_v50 = vrot.slane %v478_v12, 1  ;;  %v991_v1 = vrot.slane %v504_v26, 2 }
 0x121   : > { %1895 = vmatprep.mubr.bf16.mxu1 %v1262_v51  ;;  %v830_v55 = vadd.f32 %v785_v9, %v733_v57  ;;  %v992_v18 = vrot.slane %v505_v58, 2  ;;  %v994_v59 = vrot.slane %v506_v7, 2  ;;  %v897_v22 = vsel %vm670_vm0, %v895_v20, %v896_v8 }
 0x122   : > { %v831_v2 = vadd.f32 %v787_v4, %v734_v38  ;;  %v899_v27 = vsel %vm670_vm0, %v896_v8, %v898_v50  ;;  %v1103_v29 = vrot.slane %v603_v44, 1  ;;  %v1104_v41 = vrot.slane %v604_v25, 1 }
 0x123   : > { %v846_v35 = vadd.f32 %v830_v55, %v453_v11  ;;  %v1106_v16 = vrot.slane %v605_v32, 1  ;;  %v993_v36 = vsel %vm767_vm1, %v991_v1, %v992_v18  ;;  %v1199_v6 = vrot.slane %v631_v49, 2 }
 0x124   : > { %v847_v17 = vadd.f32 %v831_v2, %v454_v60  ;;  %v1200_v42 = vrot.slane %v632_v53, 2  ;;  %v580_v10 = vmul.f32 %v2598_v0, %v2540_v47  ;;  %v995_v26 = vsel %vm767_vm1, %v992_v18, %v994_v59  ;;  %v1629_v60 = vld [vmem:[%s2492_s1 + $0x68] sm:$0xf] }
 0x125   : > { %v942_v12 = vadd.f32 %v897_v22, %v846_v35  ;;  %v1202_v58 = vrot.slane %v633_v45, 2  ;;  %v2987_v7 = vunpack.c.h.bf16 %v2883_v30  ;;  %v581_v11 = vmul.f32 %v2608_v5, %v2540_v47 }
 0x126   : > { %v943_v44 = vadd.f32 %v899_v27, %v847_v17  ;;  %v1105_v28 = vsel %vm670_vm0, %v1103_v29, %v1104_v41  ;;  %v1107_v25 = vsel %vm670_vm0, %v1104_v41, %v1106_v16  ;;  %v334_v0 = vmul.f32 %v2645_v39, %v2496_v13 }
 0x127   : > { %v1038_v62 = vadd.f32 %v993_v36, %v942_v12  ;;  %v1201_v49 = vsel %vm767_vm1, %v1199_v6, %v1200_v42  ;;  %v335_v30 = vmul.f32 %v2773_v56, %v2496_v13  ;;  %v361_v53 = vmul.f32 %v2645_v39, %v2498_v14 }
 0x128   : > { %v1039_v32 = vadd.f32 %v995_v26, %v943_v44  ;;  %v1203_v3 = vsel %vm767_vm1, %v1200_v42, %v1202_v58  ;;  %v362_v31 = vmul.f32 %v2773_v56, %v2498_v14  ;;  %v442_v61 = vunpack.c.l.bf16 %v1629_v60 }
 0x129   : > { %v1054_v5 = vadd.f32 %v1038_v62, %v580_v10  ;;  %v363_v63 = vmul.f32 %v2775_v37, %v2498_v14  ;;  %v389_v24 = vmul.f32 %v2645_v39, %v2500_v15  ;;  %v390_v13 = vmul.f32 %v2773_v56, %v2500_v15 }
 0x12a   : > { %v1055_v33 = vadd.f32 %v1039_v32, %v581_v11  ;;  %v391_v20 = vmul.f32 %v2775_v37, %v2500_v15  ;;  %v461_v8 = vmul.f32 %v2895_v34, %v2504_v21  ;;  %v462_v51 = vmul.f32 %v2897_v54, %v2504_v21 }
 0x12b   : > { %v1150_v19 = vadd.f32 %v1105_v28, %v1054_v5  ;;  %v488_v14 = vmul.f32 %v2895_v34, %v2506_v23  ;;  %v489_v39 = vmul.f32 %v2897_v54, %v2506_v23  ;;  %v1815_v57 = vunpack.c.l.bf16 %v1850_v46 }
 0x12c   : > { %v1151_v40 = vadd.f32 %v1107_v25, %v1055_v33  ;;  %v490_v56 = vmul.f32 %v2506_v23, %v442_v61  ;;  %v516_v15 = vmul.f32 %v2895_v34, %v2534_v43  ;;  %v706_v37 = vrot.slane %v361_v53, 1 }
 0x12d   : > { %v1246_v9 = vadd.f32 %v1201_v49, %v1150_v19  ;;  %v517_v38 = vmul.f32 %v2897_v54, %v2534_v43  ;;  %v518_v21 = vmul.f32 %v2534_v43, %v442_v61  ;;  %v1816_v4 = vunpack.c.h.bf16 %v1850_v46 }
 0x12e   : > { %v1247_v45 = vadd.f32 %v1203_v3, %v1151_v40  ;;  %v615_v50 = vmul.f32 %v2987_v7, %v2542_v48  ;;  %v616_v55 = vmul.f32 %v1815_v57, %v2542_v48  ;;  %v707_v1 = vrot.slane %v362_v31, 1 }
 0x12f   : > { %v709_v18 = vrot.slane %v363_v63, 1  ;;  %v803_v23 = vrot.slane %v389_v24, 2  ;;  %v804_v2 = vrot.slane %v390_v13, 2  ;;  %v806_v22 = vrot.slane %v391_v20, 2 }
 0x130   : > { %v1259_v59 = vpack.c.bf16 %v1247_v45, %v1246_v9  ;;  %v708_v34 = vsel %vm670_vm0, %v706_v37, %v707_v1  ;;  %v915_v35 = vrot.slane %v488_v14, 1  ;;  %v916_v54 = vrot.slane %v489_v39, 1 }
 0x131   : > { %v710_v27 = vsel %vm670_vm0, %v707_v1, %v709_v18  ;;  %v741_v43 = vadd.f32 %v708_v34, %v334_v0  ;;  %v805_v41 = vsel %vm767_vm1, %v803_v23, %v804_v2  ;;  %v807_v16 = vsel %vm767_vm1, %v804_v2, %v806_v22 }
 0x132   : > { %1888 = vmatmul.mubr.bf16.gmra.mrb[4].mxu0 %v1259_v59  ;;  %v742_v29 = vadd.f32 %v710_v27, %v335_v30  ;;  %v617_v17 = vmul.f32 %v1816_v4, %v2542_v48  ;;  %v918_v36 = vrot.slane %v490_v56, 1  ;;  %v1011_v6 = vrot.slane %v516_v15, 2 }
 0x133   : > { %v1012_v42 = vrot.slane %v517_v38, 2  ;;  %v643_v10 = vmul.f32 %v2987_v7, %v2549_v52  ;;  %v838_v12 = vadd.f32 %v805_v41, %v741_v43  ;;  %v1014_v58 = vrot.slane %v518_v21, 2 }
 0x134   : > { %v839_v26 = vadd.f32 %v807_v16, %v742_v29  ;;  %v644_v11 = vmul.f32 %v1815_v57, %v2549_v52  ;;  %v645_v44 = vmul.f32 %v1816_v4, %v2549_v52  ;;  %v917_v60 = vsel %vm670_vm0, %v915_v35, %v916_v54 }
 0x135   : > { %v919_v62 = vsel %vm670_vm0, %v916_v54, %v918_v36  ;;  %v854_v28 = vadd.f32 %v838_v12, %v461_v8  ;;  %v1123_v48 = vrot.slane %v615_v50, 1  ;;  %v1013_v0 = vsel %vm767_vm1, %v1011_v6, %v1012_v42 }
 0x136   : > { %v855_v25 = vadd.f32 %v839_v26, %v462_v51  ;;  %v1015_v32 = vsel %vm767_vm1, %v1012_v42, %v1014_v58  ;;  %v1124_v49 = vrot.slane %v616_v55, 1  ;;  %v1126_v30 = vrot.slane %v617_v17, 1 }
 0x137   : > { %v588_v53 = vmul.f32 %v2987_v7, %v2540_v47  ;;  %v589_v5 = vmul.f32 %v1815_v57, %v2540_v47  ;;  %v950_v3 = vadd.f32 %v917_v60, %v854_v28  ;;  %v1219_v31 = vrot.slane %v643_v10, 2  ;;  %v1655_v57 = vld [vmem:[%s3135_s2] ss:$0 sm:$0xff] }
 0x138   : > { %v951_v52 = vadd.f32 %v919_v62, %v855_v25  ;;  %v1220_v61 = vrot.slane %v644_v11, 2  ;;  %v1222_v46 = vrot.slane %v645_v44, 2  ;;  %v1125_v24 = vsel %vm670_vm0, %v1123_v48, %v1124_v49 }
 0x139   : > { %v1046_v33 = vadd.f32 %v1013_v0, %v950_v3  ;;  %v1127_v13 = vsel %vm670_vm0, %v1124_v49, %v1126_v30 }
 0x13a   : > { %v1047_v63 = vadd.f32 %v1015_v32, %v951_v52  ;;  %v1221_v8 = vsel %vm767_vm1, %v1219_v31, %v1220_v61  ;;  %v1223_v7 = vsel %vm767_vm1, %v1220_v61, %v1222_v46 }
 0x13b   : > { %v1062_v19 = vadd.f32 %v1046_v33, %v588_v53 }
 0x13c   : > { %v1063_v20 = vadd.f32 %v1047_v63, %v589_v5 }
 0x13d   : > { %v1158_v47 = vadd.f32 %v1125_v24, %v1062_v19 }
 0x13e   : > { %v1159_v51 = vadd.f32 %v1127_v13, %v1063_v20 }
 0x13f   : > { %v1254_v40 = vadd.f32 %v1221_v8, %v1158_v47 }
 0x140   : > { %v1255_v14 = vadd.f32 %v1223_v7, %v1159_v51 }
 0x142   : > { %v1263_v39 = vpack.c.bf16 %v1255_v14, %v1254_v40 }
 0x144   : > { %1896 = vmatmul.mubr.bf16.gmra.mrb[4].mxu1 %v1263_v39 }
 0x1bc   : > { %v1885_v9 = vpop.f32.mrb[0].mxu0 }
 0x1bd   : > { %v1378_v56 = vadd.f32 %v1885_v9, %v1655_v57  ;;  %v1369_v15 = vpop.f32.mrb[1].mxu0 }
 0x1be   : > { %v1370_v37 = vadd.f32 %v1655_v57, %v1369_v15  ;;  %v1886_v45 = vpop.f32.mrb[2].mxu0 }
 0x1bf   : > { %1434 = vst [vmem:[%s2488_s3 + $0x10] sm:$0xff] %v1378_v56  ;;  %v1381_v38 = vadd.f32 %v1886_v45, %v1655_v57  ;;  %v1372_v21 = vpop.f32.mrb[3].mxu0 }
 0x1c0   : > { %1432 = vst [vmem:[%s2488_s3] sm:$0xff] %v1370_v37  ;;  %v1373_v4 = vadd.f32 %v1655_v57, %v1372_v21 }
 0x1c1   : > { %1435 = vst [vmem:[%s2488_s3 + $0x18] sm:$0xff] %v1381_v38 }
 0x1c2   : > { %1433 = vst [vmem:[%s2488_s3 + $0x8] sm:$0xff] %v1373_v4 }
 0x1cf   : > { %v1893_v50 = vpop.f32.mrb[0].mxu1 }
 0x1d0   : > { %v1410_v55 = vadd.f32 %v1893_v50, %v1655_v57  ;;  %v1401_v1 = vpop.f32.mrb[1].mxu1 }
 0x1d1   : > { %v1402_v18 = vadd.f32 %v1655_v57, %v1401_v1  ;;  %v1894_v59 = vpop.f32.mrb[2].mxu1 }
 0x1d2   : > { %1442 = vst [vmem:[%s2488_s3 + $0x50] sm:$0xff] %v1410_v55  ;;  %v1413_v23 = vadd.f32 %v1894_v59, %v1655_v57  ;;  %v1404_v2 = vpop.f32.mrb[3].mxu1 }
 0x1d3   : > { %1440 = vst [vmem:[%s2488_s3 + $0x40] sm:$0xff] %v1402_v18  ;;  %v1405_v22 = vadd.f32 %v1655_v57, %v1404_v2 }
 0x1d4   : > { %1443 = vst [vmem:[%s2488_s3 + $0x58] sm:$0xff] %v1413_v23 }
 0x1d5   : > { %1441 = vst [vmem:[%s2488_s3 + $0x48] sm:$0xff] %v1405_v22 }
 0x205   : > { %v1889_v34 = vpop.f32.mrb[4].mxu0 }
 0x206   : > { %v1394_v27 = vadd.f32 %v1889_v34, %v1655_v57  ;;  %v1385_v35 = vpop.f32.mrb[5].mxu0 }
 0x207   : > { %v1386_v54 = vadd.f32 %v1655_v57, %v1385_v35  ;;  %v1890_v43 = vpop.f32.mrb[6].mxu0 }
 0x208   : > { %1438 = vst [vmem:[%s2488_s3 + $0x30] sm:$0xff] %v1394_v27  ;;  %v1397_v29 = vadd.f32 %v1890_v43, %v1655_v57  ;;  %v1388_v41 = vpop.f32.mrb[7].mxu0 }
 0x209   : > { %1436 = vst [vmem:[%s2488_s3 + $0x20] sm:$0xff] %v1386_v54  ;;  %v1389_v16 = vadd.f32 %v1655_v57, %v1388_v41 }
 0x20a   : > { %1439 = vst [vmem:[%s2488_s3 + $0x38] sm:$0xff] %v1397_v29 }
 0x20b   : > { %1437 = vst [vmem:[%s2488_s3 + $0x28] sm:$0xff] %v1389_v16 }
 0x217   : > { %v1897_v17 = vpop.f32.mrb[4].mxu1 }
 0x218   : > { %v1426_v36 = vadd.f32 %v1897_v17, %v1655_v57  ;;  %v1417_v6 = vpop.f32.mrb[5].mxu1 }
 0x219   : > { %v1418_v42 = vadd.f32 %v1655_v57, %v1417_v6  ;;  %v1898_v10 = vpop.f32.mrb[6].mxu1 }
 0x21a   : > { %1446 = vst [vmem:[%s2488_s3 + $0x70] sm:$0xff] %v1426_v36  ;;  %v1429_v12 = vadd.f32 %v1898_v10, %v1655_v57  ;;  %v1420_v26 = vpop.f32.mrb[7].mxu1 }
 0x21b   : > { %1444 = vst [vmem:[%s2488_s3 + $0x60] sm:$0xff] %v1418_v42  ;;  %v1421_v58 = vadd.f32 %v1655_v57, %v1420_v26 }
 0x21c   : > { %1447 = vst [vmem:[%s2488_s3 + $0x78] sm:$0xff] %v1429_v12 }
 0x21d   : > { %1445 = vst [vmem:[%s2488_s3 + $0x68] sm:$0xff] %v1421_v58 }
 0x21e   : > { %2152 = shalt.err (!%p2149_p12)
}
 0x21f   : > { %s2153_s5 = scalar_lea.hbm %s3072_s18, 2048  ;;  %s2157_s20 = scalar_lea.hbm %s3137_s4, 8192 }
 0x220   : > { %p2154_p4 = scmp.ne.s32.totalorder %s3072_s18, %s2153_s5  ;;  %p2158_p0 = scmp.lt.u32.totalorder %s3072_s18, %s3137_s4 }
 0x221   : > { %p2159_p2 = scmp.lt.u32.totalorder %s2157_s20, %s2153_s5  ;;  %p2161_p6 = scmp.lt.u32.totalorder %s2153_s5, %s3072_s18 }
 0x222   : > { %p2155_p5 = pnand %p2154_p4, %p3169_p7 }
 0x223   : > { %p2160_p9 = por %p2159_p2, %p2158_p0 }
 0x224   : > { %p2156_p1 = pneg %p2155_p5 }
 0x225   : > { %p2162_p11 = por %p2161_p6, %p2160_p9 }
 0x227   : > { %p2163_p13 = pnand %p2162_p11, %p2156_p1 }
 0x229   : > { %2166 = shalt.err (!%p2163_p13)
}
 0x22a   : > { %s2251_s21 = smov 128   ;;  %s2252_s7 = smov 8  }
 0x22b   : > { %1927 = dma.vmem_to_hbm [thread:$0]  (%p3169_p7), %s3074_s26, 2048, %s3072_s18, %s3081_s28, %s2251_s21, %s2251_s21, %s2252_s7  }
 0x22c PF: > { %p1946_p3 = scmp.ge.s32.totalorder %s2243_s22, 2  ;;  %s1480_s6 = sand.u32 1, %s2215_s15  }
 0x22d   : > { %p3170_p8 = scmp.ne.s32.totalorder %s3156_s30, 0  ;;  %s1481_s25 = scalar_lea.sflag [#allocation6], %s1480_s6 }
 0x22f   : > { %p1937_p10 = pnand %p1946_p3, %p3170_p8 }
 0x231   : > { %2210 = dma.done.wait (!%p1937_p10), %s1481_s25, 2048  }
 0x232   : > { %2212 = vsyncadd (!%p1937_p10), %s1481_s25, 4294965248  ;;  %s19_s22 = sadd.s32 1, %s2243_s22   ;;  %s3171_s10 = sld [smem:[#allocation24_spill]] }
 0x233   : > { %p16_p12 = scmp.ge.s32.totalorder %s19_s22, 6   ;;  %s3172_s18 = sld [smem:[#allocation20_spill]] }
 0x234   : > { %s3173_s19 = sld [smem:[#allocation21_spill]]  ;;  %s3174_s20 = sld [smem:[#allocation22_spill]] }
 0x235   : > { %s3175_s21 = sld [smem:[#allocation23_spill]]  ;;  %s3176_s15 = smov %s2219_s16 }
 0x236   : > { %s3177_s16 = smov %s2223_s17  ;;  %18 = sbr.rel (!%p16_p12) target bundleno = 10 (0xa), region = 98 }
 0x238   : > { %s3178_s17 = smov %s3171_s10 }
 0x23d   :  { %1486 = vsyncpa [#allocation5], 1 }
 0x23e   :  { %1488 = vsyncpa [#allocation5 + $0x1], 1 }
 0x23f   :  { %1489 = vsyncpa [#allocation8], 1 }
 0x240   :  { %1490 = vsyncpa [#allocation6], 1 }
 0x241   :  { %1492 = vsyncpa [#allocation6 + $0x1], 1 }
 0x242   :  { %1493 = vsyncmov [#allocation3] }
 0x245   :  { %s1494_s29 = vpop.sfrf %1493 }
 0x246   :  { %p1671_p7 = scmp.ne.s32.totalorder %s1494_s29, 0 }
 0x248   :  { %1498 = shalt.err (%p1671_p7)  }
 0x249   :  { %1500 = vsyncmov [#allocation3 + $0x1] }
 0x24c   :  { %s1501_s30 = vpop.sfrf %1500 }
 0x24d   :  { %p1672_p4 = scmp.ne.s32.totalorder %s1501_s30, 0 }
 0x24f   :  { %1505 = shalt.err (%p1672_p4)  }

</bundles_post_ra>
